<compile_context>
chip_gen: v5e
topology: v5e:2x2
jax: 0.10.0
libtpu: 0.0.40
codegen_flags: <defaults>
</compile_context>

<pallas_src>
import functools

import jax
import jax.numpy as jnp
from jax.experimental import pallas as pl
from jax.experimental.pallas import tpu as pltpu


# ----------------------------------------------------------------------------
# Fused kernel for one grid step (bb batch elements):
#   shallow_ref: (bb, C, in_h*in_w)    flattened NCHW spatial
#   cur_ref    : (bb, C, n_out)
#   deep_ref   : (bb, C, n_dp)
#   s_ref      : (9, n_in, n_out)      bf16 per-tap 0/1 selection matrices
#   w_ref      : (9, C, C)             bf16 per-tap conv weights (BN scale folded)
#   bias_ref   : (C, 1)                f32 folded BN bias
#   up_ref     : (n_dp, n_out)         bf16 bilinear (align_corners=True) matrix
#   out_ref    : (1, C, bb*n_out)      lane-dense output block
# ----------------------------------------------------------------------------
def dens_fuse_kernel(shallow_ref, cur_ref, deep_ref, s_ref, w_ref, bias_ref,
                     up_ref, out_ref, *, bb, C, n_out):
    outs = []
    for b in range(bb):                                   # static unroll
        x = shallow_ref[b].astype(jnp.bfloat16)           # (C, n_in)

        # Strided 3x3 conv as 9 tap-wise MXU matmuls into an f32 accumulator
        # (selection matrices implement the gather + zero padding exactly).
        acc = jnp.zeros((C, n_out), jnp.float32)
        for t in range(9):
            patch = jnp.dot(x, s_ref[t],
                            preferred_element_type=jnp.float32)    # (C, n_out)
            acc = acc + jnp.dot(w_ref[t], patch.astype(jnp.bfloat16),
                                preferred_element_type=jnp.float32)

        # Folded-BN bias + Mish (numerically stable softplus), f32 epilogue.
        y = acc + bias_ref[...]
        sp = jnp.maximum(y, 0.0) + jnp.log1p(jnp.exp(-jnp.abs(y)))
        y = y * jnp.tanh(sp)

        # Bilinear upsample of the deep feature as one small matmul.
        up = jnp.dot(deep_ref[b].astype(jnp.bfloat16), up_ref[...],
                     preferred_element_type=jnp.float32)           # (C, n_out)

        outs.append(y + cur_ref[b] + up)

    out_ref[0] = jnp.concatenate(outs, axis=-1).astype(out_ref.dtype)


# ----------------------------------------------------------------------------
# Host precompute: im2col selection matrices, bilinear matrix, packing factor.
# ----------------------------------------------------------------------------
def _selection_stack(in_h, in_w, out_h, out_w):
    """(9, in_h*in_w, out_h*out_w) 0/1 matrices for conv3x3 stride-2 pad-1."""
    n_in = in_h * in_w
    n_out = out_h * out_w
    p = jnp.arange(n_out)
    oh = p // out_w
    ow = p % out_w
    mats = []
    for t in range(9):
        dh, dw = t // 3, t % 3
        ih = 2 * oh + dh - 1
        iw = 2 * ow + dw - 1
        valid = (ih >= 0) & (ih < in_h) & (iw >= 0) & (iw < in_w)
        src = jnp.where(valid, ih * in_w + iw, 0)
        m = jax.nn.one_hot(src, n_in, dtype=jnp.float32)
        m = m * valid[:, None].astype(jnp.float32)
        mats.append(m.T)                                  # (n_in, n_out)
    return jnp.stack(mats, axis=0)


def _axis_weights(n_in, n_out):
    if n_out == 1:
        src = jnp.zeros((1,), jnp.float32)
    else:
        src = jnp.arange(n_out, dtype=jnp.float32) * ((n_in - 1) / (n_out - 1))
    i0 = jnp.floor(src).astype(jnp.int32)
    i1 = jnp.minimum(i0 + 1, n_in - 1)
    frac = src - i0
    r = jnp.zeros((n_out, n_in), jnp.float32)
    r = r.at[jnp.arange(n_out), i0].add(1.0 - frac)
    r = r.at[jnp.arange(n_out), i1].add(frac)
    return r                                              # (n_out, n_in)


def _bilinear_matrix(hd, wd, ho, wo):
    rh = _axis_weights(hd, ho)                            # (ho, hd)
    rw = _axis_weights(wd, wo)                            # (wo, wd)
    # U[ih*wd+iw, oh*wo+ow] = rh[oh, ih] * rw[ow, iw]
    return jnp.kron(rh.T, rw.T).astype(jnp.float32)       # (hd*wd, ho*wo)


def _pick_pack(B, n_out):
    """Smallest divisor of B whose packed lane width reaches 128 (if any)."""
    bb = 1
    for cand in range(1, B + 1):
        if B % cand == 0:
            bb = cand
            if cand * n_out >= 128:
                break
    return bb


# ----------------------------------------------------------------------------
# Wrapper: DensFuse.forward
# ----------------------------------------------------------------------------
def dens_fuse_forward(shallow, current, deep, params):
    B, C, Hs, Ws = shallow.shape
    _, _, H, W = current.shape
    _, _, Hd, Wd = deep.shape
    assert (Hs, Ws) == (2 * H, 2 * W), "conv_downsample(shallow) must match current"
    n_in, n_out, n_dp = Hs * Ws, H * W, Hd * Wd

    # Fold BatchNorm (eval mode): scale goes into the conv weight, bias stays.
    eps = 1e-5
    scale = params["bn_gamma"] / jnp.sqrt(params["bn_var"] + eps)          # (C,)
    bias = (params["bn_beta"] - params["bn_mean"] * scale).reshape(C, 1)
    bias = bias.astype(jnp.float32)

    # (C_out, C_in, 3, 3) * scale -> 9 per-tap (C_out, C_in) matrices, t = dh*3+dw.
    w_scaled = params["conv_w"].astype(jnp.float32) * scale[:, None, None, None]
    wstk = jnp.transpose(w_scaled, (2, 3, 0, 1)).reshape(9, C, C)
    wstk = wstk.astype(jnp.bfloat16)

    sstk = _selection_stack(Hs, Ws, H, W).astype(jnp.bfloat16)   # (9, n_in, n_out)
    up_mat = _bilinear_matrix(Hd, Wd, H, W).astype(jnp.bfloat16) # (n_dp, n_out)

    # Lane-density vs multi-TC trade-off: pack bb batch elements per block so
    # the output block's lane width is >=128 whenever B allows it.
    bb = _pick_pack(B, n_out)
    grid = (B // bb,)

    # Contiguous (free) reshapes only on the inputs.
    shallow_f = shallow.reshape(B, C, n_in)
    current_f = current.reshape(B, C, n_out).astype(jnp.float32)
    deep_f = deep.reshape(B, C, n_dp)

    out = pl.pallas_call(
        functools.partial(dens_fuse_kernel, bb=bb, C=C, n_out=n_out),
        out_shape=jax.ShapeDtypeStruct((B // bb, C, bb * n_out), jnp.float32),
        grid=grid,
        in_specs=[
            pl.BlockSpec((bb, C, n_in), lambda g: (g, 0, 0)),
            pl.BlockSpec((bb, C, n_out), lambda g: (g, 0, 0)),
            pl.BlockSpec((bb, C, n_dp), lambda g: (g, 0, 0)),
            pl.BlockSpec((9, n_in, n_out), lambda g: (0, 0, 0)),   # constants:
            pl.BlockSpec((9, C, C), lambda g: (0, 0, 0)),          # DMA'd once,
            pl.BlockSpec((C, 1), lambda g: (0, 0)),                # VMEM-resident
            pl.BlockSpec((n_dp, n_out), lambda g: (0, 0)),
        ],
        out_specs=pl.BlockSpec((1, C, bb * n_out), lambda g: (g, 0, 0)),
        compiler_params=pltpu.CompilerParams(
            dimension_semantics=("parallel",)),
    )(shallow_f, current_f, deep_f, sstk, wstk, bias, up_mat)

    if bb == 1:
        return out.reshape(B, C, H, W)
    # Unpack the lane-folded batch back to NCHW (tiny transpose on the output).
    return (out.reshape(B // bb, C, bb, H, W)
               .transpose(0, 2, 1, 3, 4)
               .reshape(B, C, H, W))


# ----------------------------------------------------------------------------
# Pure-JAX reference (f32, HIGHEST precision).
# ----------------------------------------------------------------------------
def _upsample_bilinear_align_corners(x, out_hw):
    B, C, hi, wi = x.shape
    ho, wo = out_hw
    src_h = (jnp.arange(ho, dtype=jnp.float32) * ((hi - 1) / (ho - 1))
             if ho > 1 else jnp.zeros((ho,), jnp.float32))
    src_w = (jnp.arange(wo, dtype=jnp.float32) * ((wi - 1) / (wo - 1))
             if wo > 1 else jnp.zeros((wo,), jnp.float32))
    h0 = jnp.floor(src_h).astype(jnp.int32)
    h1 = jnp.minimum(h0 + 1, hi - 1)
    w0 = jnp.floor(src_w).astype(jnp.int32)
    w1 = jnp.minimum(w0 + 1, wi - 1)
    fh = (src_h - h0)[None, None, :, None]
    fw = (src_w - w0)[None, None, None, :]
    top = x[:, :, h0, :][:, :, :, w0] * (1 - fw) + x[:, :, h0, :][:, :, :, w1] * fw
    bot = x[:, :, h1, :][:, :, :, w0] * (1 - fw) + x[:, :, h1, :][:, :, :, w1] * fw
    return top * (1 - fh) + bot * fh


def reference(shallow, current, deep, params):
    eps = 1e-5
    conv = jax.lax.conv_general_dilated(
        shallow, params["conv_w"], window_strides=(2, 2),
        padding=((1, 1), (1, 1)),
        dimension_numbers=("NCHW", "OIHW", "NCHW"),
        precision=jax.lax.Precision.HIGHEST)
    g = params["bn_gamma"][None, :, None, None]
    be = params["bn_beta"][None, :, None, None]
    mu = params["bn_mean"][None, :, None, None]
    var = params["bn_var"][None, :, None, None]
    y = (conv - mu) / jnp.sqrt(var + eps) * g + be
    y = y * jnp.tanh(jax.nn.softplus(y))                  # Mish
    up = _upsample_bilinear_align_corners(deep, current.shape[-2:])
    return y + current + up


if __name__ == "__main__":
    B, C = 2, 32
    H, W = 8, 8                                           # current spatial size

    key = jax.random.PRNGKey(0)
    ks = jax.random.split(key, 8)

    shallow = jax.random.normal(ks[0], (B, C, 2 * H, 2 * W), dtype=jnp.float32)
    current = jax.random.normal(ks[1], (B, C, H, W), dtype=jnp.float32)
    deep = jax.random.normal(ks[2], (B, C, H // 2, W // 2), dtype=jnp.float32)

    params = {
        "conv_w": jax.random.normal(ks[3], (C, C, 3, 3), dtype=jnp.float32) * 0.05,
        "bn_gamma": 1.0 + 0.1 * jax.random.normal(ks[4], (C,), dtype=jnp.float32),
        "bn_beta": 0.1 * jax.random.normal(ks[5], (C,), dtype=jnp.float32),
        "bn_mean": 0.1 * jax.random.normal(ks[6], (C,), dtype=jnp.float32),
        "bn_var": jax.random.uniform(ks[7], (C,), jnp.float32, 0.5, 1.5),
    }

    fwd = jax.jit(dens_fuse_forward)
    out = jax.block_until_ready(fwd(shallow, current, deep, params))

    ref = reference(shallow, current, deep, params)
    assert out.shape == (B, C, H, W)
    # bf16 MXU operands (recommended for v6e/v7x) -> tolerance re-validated vs
    # the f32 HIGHEST-precision reference.
    max_err = float(jnp.max(jnp.abs(out - ref)))
    assert bool(jnp.allclose(out, ref, atol=5e-2, rtol=5e-2)), f"max |err|={max_err}"

    print("KERNEL_OK")
</pallas_src>

<mosaic_0001>
module attributes {stable_mosaic.version = 11 : i64} {
  func.func @dens_fuse_kernel(%arg0: i32, %arg1: memref<2x32x256xf32, #tpu.memory_space<vmem>>, %arg2: memref<2x32x64xf32, #tpu.memory_space<vmem>>, %arg3: memref<2x32x16xf32, #tpu.memory_space<vmem>>, %arg4: memref<9x256x64xbf16, #tpu.memory_space<vmem>>, %arg5: memref<9x32x32xbf16, #tpu.memory_space<vmem>>, %arg6: memref<32x1xf32, #tpu.memory_space<vmem>>, %arg7: memref<16x64xbf16, #tpu.memory_space<vmem>>, %arg8: memref<1x32x128xf32, #tpu.memory_space<vmem>>) attributes {dimension_semantics = [#tpu.dimension_semantics<parallel>], iteration_bounds = array<i64: 1>, scalar_prefetch = 0 : i64, scratch_operands = 0 : i64, tpu.core_type = #tpu.core_type<tc>, window_params = [{transform_indices = @transform_0, window_bounds = array<i64: 2, 32, 256>}, {transform_indices = @transform_1, window_bounds = array<i64: 2, 32, 64>}, {transform_indices = @transform_2, window_bounds = array<i64: 2, 32, 16>}, {pipeline_mode = #tpu.pipeline_mode<synchronous>, transform_indices = @transform_3, window_bounds = array<i64: 9, 256, 64>}, {pipeline_mode = #tpu.pipeline_mode<synchronous>, transform_indices = @transform_4, window_bounds = array<i64: 9, 32, 32>}, {pipeline_mode = #tpu.pipeline_mode<synchronous>, transform_indices = @transform_5, window_bounds = array<i64: 32, 1>}, {pipeline_mode = #tpu.pipeline_mode<synchronous>, transform_indices = @transform_6, window_bounds = array<i64: 16, 64>}, {transform_indices = @transform_7, window_bounds = array<i64: 1, 32, 128>}]} {
    %c0 = arith.constant 0 : index
    %c0_0 = arith.constant 0 : index
    %c0_1 = arith.constant 0 : index
    %0 = vector.load %arg1[%c0, %c0_0, %c0_1] : memref<2x32x256xf32, #tpu.memory_space<vmem>>, vector<1x32x256xf32>
    %1 = vector.shape_cast %0 : vector<1x32x256xf32> to vector<32x256xf32>
    %2 = arith.truncf %1 : vector<32x256xf32> to vector<32x256xbf16>
    %cst = arith.constant 0.000000e+00 : f32
    %3 = vector.broadcast %cst : f32 to vector<32x64xf32>
    %c0_2 = arith.constant 0 : index
    %c0_3 = arith.constant 0 : index
    %c0_4 = arith.constant 0 : index
    %4 = vector.load %arg4[%c0_2, %c0_3, %c0_4] : memref<9x256x64xbf16, #tpu.memory_space<vmem>>, vector<1x256x64xbf16>
    %5 = vector.shape_cast %4 : vector<1x256x64xbf16> to vector<256x64xbf16>
    %cst_5 = arith.constant dense<0.000000e+00> : vector<32x64xf32>
    %6 = tpu.matmul %2, %5, %cst_5 {dimension_numbers = #tpu.dot_dimension_numbers<[1], [0], [0], [1], [0, 0, 1, 1], [], []>} : vector<32x256xbf16>, vector<256x64xbf16>, vector<32x64xf32> -> vector<32x64xf32>
    %c0_6 = arith.constant 0 : index
    %c0_7 = arith.constant 0 : index
    %c0_8 = arith.constant 0 : index
    %7 = vector.load %arg5[%c0_6, %c0_7, %c0_8] : memref<9x32x32xbf16, #tpu.memory_space<vmem>>, vector<1x32x32xbf16>
    %8 = vector.shape_cast %7 : vector<1x32x32xbf16> to vector<32x32xbf16>
    %9 = arith.truncf %6 : vector<32x64xf32> to vector<32x64xbf16>
    %cst_9 = arith.constant dense<0.000000e+00> : vector<32x64xf32>
    %10 = tpu.matmul %8, %9, %cst_9 {dimension_numbers = #tpu.dot_dimension_numbers<[1], [0], [0], [1], [0, 0, 1, 1], [], []>} : vector<32x32xbf16>, vector<32x64xbf16>, vector<32x64xf32> -> vector<32x64xf32>
    %11 = arith.addf %3, %10 : vector<32x64xf32>
    %c1 = arith.constant 1 : index
    %c0_10 = arith.constant 0 : index
    %c0_11 = arith.constant 0 : index
    %12 = vector.load %arg4[%c1, %c0_10, %c0_11] : memref<9x256x64xbf16, #tpu.memory_space<vmem>>, vector<1x256x64xbf16>
    %13 = vector.shape_cast %12 : vector<1x256x64xbf16> to vector<256x64xbf16>
    %cst_12 = arith.constant dense<0.000000e+00> : vector<32x64xf32>
    %14 = tpu.matmul %2, %13, %cst_12 {dimension_numbers = #tpu.dot_dimension_numbers<[1], [0], [0], [1], [0, 0, 1, 1], [], []>} : vector<32x256xbf16>, vector<256x64xbf16>, vector<32x64xf32> -> vector<32x64xf32>
    %c1_13 = arith.constant 1 : index
    %c0_14 = arith.constant 0 : index
    %c0_15 = arith.constant 0 : index
    %15 = vector.load %arg5[%c1_13, %c0_14, %c0_15] : memref<9x32x32xbf16, #tpu.memory_space<vmem>>, vector<1x32x32xbf16>
    %16 = vector.shape_cast %15 : vector<1x32x32xbf16> to vector<32x32xbf16>
    %17 = arith.truncf %14 : vector<32x64xf32> to vector<32x64xbf16>
    %cst_16 = arith.constant dense<0.000000e+00> : vector<32x64xf32>
    %18 = tpu.matmul %16, %17, %cst_16 {dimension_numbers = #tpu.dot_dimension_numbers<[1], [0], [0], [1], [0, 0, 1, 1], [], []>} : vector<32x32xbf16>, vector<32x64xbf16>, vector<32x64xf32> -> vector<32x64xf32>
    %19 = arith.addf %11, %18 : vector<32x64xf32>
    %c2 = arith.constant 2 : index
    %c0_17 = arith.constant 0 : index
    %c0_18 = arith.constant 0 : index
    %20 = vector.load %arg4[%c2, %c0_17, %c0_18] : memref<9x256x64xbf16, #tpu.memory_space<vmem>>, vector<1x256x64xbf16>
    %21 = vector.shape_cast %20 : vector<1x256x64xbf16> to vector<256x64xbf16>
    %cst_19 = arith.constant dense<0.000000e+00> : vector<32x64xf32>
    %22 = tpu.matmul %2, %21, %cst_19 {dimension_numbers = #tpu.dot_dimension_numbers<[1], [0], [0], [1], [0, 0, 1, 1], [], []>} : vector<32x256xbf16>, vector<256x64xbf16>, vector<32x64xf32> -> vector<32x64xf32>
    %c2_20 = arith.constant 2 : index
    %c0_21 = arith.constant 0 : index
    %c0_22 = arith.constant 0 : index
    %23 = vector.load %arg5[%c2_20, %c0_21, %c0_22] : memref<9x32x32xbf16, #tpu.memory_space<vmem>>, vector<1x32x32xbf16>
    %24 = vector.shape_cast %23 : vector<1x32x32xbf16> to vector<32x32xbf16>
    %25 = arith.truncf %22 : vector<32x64xf32> to vector<32x64xbf16>
    %cst_23 = arith.constant dense<0.000000e+00> : vector<32x64xf32>
    %26 = tpu.matmul %24, %25, %cst_23 {dimension_numbers = #tpu.dot_dimension_numbers<[1], [0], [0], [1], [0, 0, 1, 1], [], []>} : vector<32x32xbf16>, vector<32x64xbf16>, vector<32x64xf32> -> vector<32x64xf32>
    %27 = arith.addf %19, %26 : vector<32x64xf32>
    %c3 = arith.constant 3 : index
    %c0_24 = arith.constant 0 : index
    %c0_25 = arith.constant 0 : index
    %28 = vector.load %arg4[%c3, %c0_24, %c0_25] : memref<9x256x64xbf16, #tpu.memory_space<vmem>>, vector<1x256x64xbf16>
    %29 = vector.shape_cast %28 : vector<1x256x64xbf16> to vector<256x64xbf16>
    %cst_26 = arith.constant dense<0.000000e+00> : vector<32x64xf32>
    %30 = tpu.matmul %2, %29, %cst_26 {dimension_numbers = #tpu.dot_dimension_numbers<[1], [0], [0], [1], [0, 0, 1, 1], [], []>} : vector<32x256xbf16>, vector<256x64xbf16>, vector<32x64xf32> -> vector<32x64xf32>
    %c3_27 = arith.constant 3 : index
    %c0_28 = arith.constant 0 : index
    %c0_29 = arith.constant 0 : index
    %31 = vector.load %arg5[%c3_27, %c0_28, %c0_29] : memref<9x32x32xbf16, #tpu.memory_space<vmem>>, vector<1x32x32xbf16>
    %32 = vector.shape_cast %31 : vector<1x32x32xbf16> to vector<32x32xbf16>
    %33 = arith.truncf %30 : vector<32x64xf32> to vector<32x64xbf16>
    %cst_30 = arith.constant dense<0.000000e+00> : vector<32x64xf32>
    %34 = tpu.matmul %32, %33, %cst_30 {dimension_numbers = #tpu.dot_dimension_numbers<[1], [0], [0], [1], [0, 0, 1, 1], [], []>} : vector<32x32xbf16>, vector<32x64xbf16>, vector<32x64xf32> -> vector<32x64xf32>
    %35 = arith.addf %27, %34 : vector<32x64xf32>
    %c4 = arith.constant 4 : index
    %c0_31 = arith.constant 0 : index
    %c0_32 = arith.constant 0 : index
    %36 = vector.load %arg4[%c4, %c0_31, %c0_32] : memref<9x256x64xbf16, #tpu.memory_space<vmem>>, vector<1x256x64xbf16>
    %37 = vector.shape_cast %36 : vector<1x256x64xbf16> to vector<256x64xbf16>
    %cst_33 = arith.constant dense<0.000000e+00> : vector<32x64xf32>
    %38 = tpu.matmul %2, %37, %cst_33 {dimension_numbers = #tpu.dot_dimension_numbers<[1], [0], [0], [1], [0, 0, 1, 1], [], []>} : vector<32x256xbf16>, vector<256x64xbf16>, vector<32x64xf32> -> vector<32x64xf32>
    %c4_34 = arith.constant 4 : index
    %c0_35 = arith.constant 0 : index
    %c0_36 = arith.constant 0 : index
    %39 = vector.load %arg5[%c4_34, %c0_35, %c0_36] : memref<9x32x32xbf16, #tpu.memory_space<vmem>>, vector<1x32x32xbf16>
    %40 = vector.shape_cast %39 : vector<1x32x32xbf16> to vector<32x32xbf16>
    %41 = arith.truncf %38 : vector<32x64xf32> to vector<32x64xbf16>
    %cst_37 = arith.constant dense<0.000000e+00> : vector<32x64xf32>
    %42 = tpu.matmul %40, %41, %cst_37 {dimension_numbers = #tpu.dot_dimension_numbers<[1], [0], [0], [1], [0, 0, 1, 1], [], []>} : vector<32x32xbf16>, vector<32x64xbf16>, vector<32x64xf32> -> vector<32x64xf32>
    %43 = arith.addf %35, %42 : vector<32x64xf32>
    %c5 = arith.constant 5 : index
    %c0_38 = arith.constant 0 : index
    %c0_39 = arith.constant 0 : index
    %44 = vector.load %arg4[%c5, %c0_38, %c0_39] : memref<9x256x64xbf16, #tpu.memory_space<vmem>>, vector<1x256x64xbf16>
    %45 = vector.shape_cast %44 : vector<1x256x64xbf16> to vector<256x64xbf16>
    %cst_40 = arith.constant dense<0.000000e+00> : vector<32x64xf32>
    %46 = tpu.matmul %2, %45, %cst_40 {dimension_numbers = #tpu.dot_dimension_numbers<[1], [0], [0], [1], [0, 0, 1, 1], [], []>} : vector<32x256xbf16>, vector<256x64xbf16>, vector<32x64xf32> -> vector<32x64xf32>
    %c5_41 = arith.constant 5 : index
    %c0_42 = arith.constant 0 : index
    %c0_43 = arith.constant 0 : index
    %47 = vector.load %arg5[%c5_41, %c0_42, %c0_43] : memref<9x32x32xbf16, #tpu.memory_space<vmem>>, vector<1x32x32xbf16>
    %48 = vector.shape_cast %47 : vector<1x32x32xbf16> to vector<32x32xbf16>
    %49 = arith.truncf %46 : vector<32x64xf32> to vector<32x64xbf16>
    %cst_44 = arith.constant dense<0.000000e+00> : vector<32x64xf32>
    %50 = tpu.matmul %48, %49, %cst_44 {dimension_numbers = #tpu.dot_dimension_numbers<[1], [0], [0], [1], [0, 0, 1, 1], [], []>} : vector<32x32xbf16>, vector<32x64xbf16>, vector<32x64xf32> -> vector<32x64xf32>
    %51 = arith.addf %43, %50 : vector<32x64xf32>
    %c6 = arith.constant 6 : index
    %c0_45 = arith.constant 0 : index
    %c0_46 = arith.constant 0 : index
    %52 = vector.load %arg4[%c6, %c0_45, %c0_46] : memref<9x256x64xbf16, #tpu.memory_space<vmem>>, vector<1x256x64xbf16>
    %53 = vector.shape_cast %52 : vector<1x256x64xbf16> to vector<256x64xbf16>
    %cst_47 = arith.constant dense<0.000000e+00> : vector<32x64xf32>
    %54 = tpu.matmul %2, %53, %cst_47 {dimension_numbers = #tpu.dot_dimension_numbers<[1], [0], [0], [1], [0, 0, 1, 1], [], []>} : vector<32x256xbf16>, vector<256x64xbf16>, vector<32x64xf32> -> vector<32x64xf32>
    %c6_48 = arith.constant 6 : index
    %c0_49 = arith.constant 0 : index
    %c0_50 = arith.constant 0 : index
    %55 = vector.load %arg5[%c6_48, %c0_49, %c0_50] : memref<9x32x32xbf16, #tpu.memory_space<vmem>>, vector<1x32x32xbf16>
    %56 = vector.shape_cast %55 : vector<1x32x32xbf16> to vector<32x32xbf16>
    %57 = arith.truncf %54 : vector<32x64xf32> to vector<32x64xbf16>
    %cst_51 = arith.constant dense<0.000000e+00> : vector<32x64xf32>
    %58 = tpu.matmul %56, %57, %cst_51 {dimension_numbers = #tpu.dot_dimension_numbers<[1], [0], [0], [1], [0, 0, 1, 1], [], []>} : vector<32x32xbf16>, vector<32x64xbf16>, vector<32x64xf32> -> vector<32x64xf32>
    %59 = arith.addf %51, %58 : vector<32x64xf32>
    %c7 = arith.constant 7 : index
    %c0_52 = arith.constant 0 : index
    %c0_53 = arith.constant 0 : index
    %60 = vector.load %arg4[%c7, %c0_52, %c0_53] : memref<9x256x64xbf16, #tpu.memory_space<vmem>>, vector<1x256x64xbf16>
    %61 = vector.shape_cast %60 : vector<1x256x64xbf16> to vector<256x64xbf16>
    %cst_54 = arith.constant dense<0.000000e+00> : vector<32x64xf32>
    %62 = tpu.matmul %2, %61, %cst_54 {dimension_numbers = #tpu.dot_dimension_numbers<[1], [0], [0], [1], [0, 0, 1, 1], [], []>} : vector<32x256xbf16>, vector<256x64xbf16>, vector<32x64xf32> -> vector<32x64xf32>
    %c7_55 = arith.constant 7 : index
    %c0_56 = arith.constant 0 : index
    %c0_57 = arith.constant 0 : index
    %63 = vector.load %arg5[%c7_55, %c0_56, %c0_57] : memref<9x32x32xbf16, #tpu.memory_space<vmem>>, vector<1x32x32xbf16>
    %64 = vector.shape_cast %63 : vector<1x32x32xbf16> to vector<32x32xbf16>
    %65 = arith.truncf %62 : vector<32x64xf32> to vector<32x64xbf16>
    %cst_58 = arith.constant dense<0.000000e+00> : vector<32x64xf32>
    %66 = tpu.matmul %64, %65, %cst_58 {dimension_numbers = #tpu.dot_dimension_numbers<[1], [0], [0], [1], [0, 0, 1, 1], [], []>} : vector<32x32xbf16>, vector<32x64xbf16>, vector<32x64xf32> -> vector<32x64xf32>
    %67 = arith.addf %59, %66 : vector<32x64xf32>
    %c8 = arith.constant 8 : index
    %c0_59 = arith.constant 0 : index
    %c0_60 = arith.constant 0 : index
    %68 = vector.load %arg4[%c8, %c0_59, %c0_60] : memref<9x256x64xbf16, #tpu.memory_space<vmem>>, vector<1x256x64xbf16>
    %69 = vector.shape_cast %68 : vector<1x256x64xbf16> to vector<256x64xbf16>
    %cst_61 = arith.constant dense<0.000000e+00> : vector<32x64xf32>
    %70 = tpu.matmul %2, %69, %cst_61 {dimension_numbers = #tpu.dot_dimension_numbers<[1], [0], [0], [1], [0, 0, 1, 1], [], []>} : vector<32x256xbf16>, vector<256x64xbf16>, vector<32x64xf32> -> vector<32x64xf32>
    %c8_62 = arith.constant 8 : index
    %c0_63 = arith.constant 0 : index
    %c0_64 = arith.constant 0 : index
    %71 = vector.load %arg5[%c8_62, %c0_63, %c0_64] : memref<9x32x32xbf16, #tpu.memory_space<vmem>>, vector<1x32x32xbf16>
    %72 = vector.shape_cast %71 : vector<1x32x32xbf16> to vector<32x32xbf16>
    %73 = arith.truncf %70 : vector<32x64xf32> to vector<32x64xbf16>
    %cst_65 = arith.constant dense<0.000000e+00> : vector<32x64xf32>
    %74 = tpu.matmul %72, %73, %cst_65 {dimension_numbers = #tpu.dot_dimension_numbers<[1], [0], [0], [1], [0, 0, 1, 1], [], []>} : vector<32x32xbf16>, vector<32x64xbf16>, vector<32x64xf32> -> vector<32x64xf32>
    %75 = arith.addf %67, %74 : vector<32x64xf32>
    %c0_66 = arith.constant 0 : index
    %c0_67 = arith.constant 0 : index
    %76 = vector.load %arg6[%c0_66, %c0_67] : memref<32x1xf32, #tpu.memory_space<vmem>>, vector<32x1xf32>
    %77 = vector.broadcast %76 : vector<32x1xf32> to vector<32x64xf32>
    %78 = arith.addf %75, %77 : vector<32x64xf32>
    %cst_68 = arith.constant 0.000000e+00 : f32
    %79 = vector.broadcast %cst_68 : f32 to vector<32x64xf32>
    %80 = arith.maximumf %78, %79 : vector<32x64xf32>
    %81 = math.absf %78 : vector<32x64xf32>
    %cst_69 = arith.constant 0.000000e+00 : f32
    %82 = vector.broadcast %cst_69 : f32 to vector<32x64xf32>
    %83 = arith.subf %82, %81 : vector<32x64xf32>
    %84 = math.exp %83 : vector<32x64xf32>
    %85 = math.log1p %84 : vector<32x64xf32>
    %86 = arith.addf %80, %85 : vector<32x64xf32>
    %87 = math.tanh %86 : vector<32x64xf32>
    %88 = arith.mulf %78, %87 : vector<32x64xf32>
    %c0_70 = arith.constant 0 : index
    %c0_71 = arith.constant 0 : index
    %c0_72 = arith.constant 0 : index
    %89 = vector.load %arg3[%c0_70, %c0_71, %c0_72] : memref<2x32x16xf32, #tpu.memory_space<vmem>>, vector<1x32x16xf32>
    %90 = vector.shape_cast %89 : vector<1x32x16xf32> to vector<32x16xf32>
    %91 = arith.truncf %90 : vector<32x16xf32> to vector<32x16xbf16>
    %c0_73 = arith.constant 0 : index
    %c0_74 = arith.constant 0 : index
    %92 = vector.load %arg7[%c0_73, %c0_74] : memref<16x64xbf16, #tpu.memory_space<vmem>>, vector<16x64xbf16>
    %cst_75 = arith.constant dense<0.000000e+00> : vector<32x64xf32>
    %93 = tpu.matmul %91, %92, %cst_75 {dimension_numbers = #tpu.dot_dimension_numbers<[1], [0], [0], [1], [0, 0, 1, 1], [], []>} : vector<32x16xbf16>, vector<16x64xbf16>, vector<32x64xf32> -> vector<32x64xf32>
    %c0_76 = arith.constant 0 : index
    %c0_77 = arith.constant 0 : index
    %c0_78 = arith.constant 0 : index
    %94 = vector.load %arg2[%c0_76, %c0_77, %c0_78] : memref<2x32x64xf32, #tpu.memory_space<vmem>>, vector<1x32x64xf32>
    %95 = vector.shape_cast %94 : vector<1x32x64xf32> to vector<32x64xf32>
    %96 = arith.addf %88, %95 : vector<32x64xf32>
    %97 = arith.addf %96, %93 : vector<32x64xf32>
    %c1_79 = arith.constant 1 : index
    %c0_80 = arith.constant 0 : index
    %c0_81 = arith.constant 0 : index
    %98 = vector.load %arg1[%c1_79, %c0_80, %c0_81] : memref<2x32x256xf32, #tpu.memory_space<vmem>>, vector<1x32x256xf32>
    %99 = vector.shape_cast %98 : vector<1x32x256xf32> to vector<32x256xf32>
    %100 = arith.truncf %99 : vector<32x256xf32> to vector<32x256xbf16>
    %cst_82 = arith.constant 0.000000e+00 : f32
    %101 = vector.broadcast %cst_82 : f32 to vector<32x64xf32>
    %c0_83 = arith.constant 0 : index
    %c0_84 = arith.constant 0 : index
    %c0_85 = arith.constant 0 : index
    %102 = vector.load %arg4[%c0_83, %c0_84, %c0_85] : memref<9x256x64xbf16, #tpu.memory_space<vmem>>, vector<1x256x64xbf16>
    %103 = vector.shape_cast %102 : vector<1x256x64xbf16> to vector<256x64xbf16>
    %cst_86 = arith.constant dense<0.000000e+00> : vector<32x64xf32>
    %104 = tpu.matmul %100, %103, %cst_86 {dimension_numbers = #tpu.dot_dimension_numbers<[1], [0], [0], [1], [0, 0, 1, 1], [], []>} : vector<32x256xbf16>, vector<256x64xbf16>, vector<32x64xf32> -> vector<32x64xf32>
    %c0_87 = arith.constant 0 : index
    %c0_88 = arith.constant 0 : index
    %c0_89 = arith.constant 0 : index
    %105 = vector.load %arg5[%c0_87, %c0_88, %c0_89] : memref<9x32x32xbf16, #tpu.memory_space<vmem>>, vector<1x32x32xbf16>
    %106 = vector.shape_cast %105 : vector<1x32x32xbf16> to vector<32x32xbf16>
    %107 = arith.truncf %104 : vector<32x64xf32> to vector<32x64xbf16>
    %cst_90 = arith.constant dense<0.000000e+00> : vector<32x64xf32>
    %108 = tpu.matmul %106, %107, %cst_90 {dimension_numbers = #tpu.dot_dimension_numbers<[1], [0], [0], [1], [0, 0, 1, 1], [], []>} : vector<32x32xbf16>, vector<32x64xbf16>, vector<32x64xf32> -> vector<32x64xf32>
    %109 = arith.addf %101, %108 : vector<32x64xf32>
    %c1_91 = arith.constant 1 : index
    %c0_92 = arith.constant 0 : index
    %c0_93 = arith.constant 0 : index
    %110 = vector.load %arg4[%c1_91, %c0_92, %c0_93] : memref<9x256x64xbf16, #tpu.memory_space<vmem>>, vector<1x256x64xbf16>
    %111 = vector.shape_cast %110 : vector<1x256x64xbf16> to vector<256x64xbf16>
    %cst_94 = arith.constant dense<0.000000e+00> : vector<32x64xf32>
    %112 = tpu.matmul %100, %111, %cst_94 {dimension_numbers = #tpu.dot_dimension_numbers<[1], [0], [0], [1], [0, 0, 1, 1], [], []>} : vector<32x256xbf16>, vector<256x64xbf16>, vector<32x64xf32> -> vector<32x64xf32>
    %c1_95 = arith.constant 1 : index
    %c0_96 = arith.constant 0 : index
    %c0_97 = arith.constant 0 : index
    %113 = vector.load %arg5[%c1_95, %c0_96, %c0_97] : memref<9x32x32xbf16, #tpu.memory_space<vmem>>, vector<1x32x32xbf16>
    %114 = vector.shape_cast %113 : vector<1x32x32xbf16> to vector<32x32xbf16>
    %115 = arith.truncf %112 : vector<32x64xf32> to vector<32x64xbf16>
    %cst_98 = arith.constant dense<0.000000e+00> : vector<32x64xf32>
    %116 = tpu.matmul %114, %115, %cst_98 {dimension_numbers = #tpu.dot_dimension_numbers<[1], [0], [0], [1], [0, 0, 1, 1], [], []>} : vector<32x32xbf16>, vector<32x64xbf16>, vector<32x64xf32> -> vector<32x64xf32>
    %117 = arith.addf %109, %116 : vector<32x64xf32>
    %c2_99 = arith.constant 2 : index
    %c0_100 = arith.constant 0 : index
    %c0_101 = arith.constant 0 : index
    %118 = vector.load %arg4[%c2_99, %c0_100, %c0_101] : memref<9x256x64xbf16, #tpu.memory_space<vmem>>, vector<1x256x64xbf16>
    %119 = vector.shape_cast %118 : vector<1x256x64xbf16> to vector<256x64xbf16>
    %cst_102 = arith.constant dense<0.000000e+00> : vector<32x64xf32>
    %120 = tpu.matmul %100, %119, %cst_102 {dimension_numbers = #tpu.dot_dimension_numbers<[1], [0], [0], [1], [0, 0, 1, 1], [], []>} : vector<32x256xbf16>, vector<256x64xbf16>, vector<32x64xf32> -> vector<32x64xf32>
    %c2_103 = arith.constant 2 : index
    %c0_104 = arith.constant 0 : index
    %c0_105 = arith.constant 0 : index
    %121 = vector.load %arg5[%c2_103, %c0_104, %c0_105] : memref<9x32x32xbf16, #tpu.memory_space<vmem>>, vector<1x32x32xbf16>
    %122 = vector.shape_cast %121 : vector<1x32x32xbf16> to vector<32x32xbf16>
    %123 = arith.truncf %120 : vector<32x64xf32> to vector<32x64xbf16>
    %cst_106 = arith.constant dense<0.000000e+00> : vector<32x64xf32>
    %124 = tpu.matmul %122, %123, %cst_106 {dimension_numbers = #tpu.dot_dimension_numbers<[1], [0], [0], [1], [0, 0, 1, 1], [], []>} : vector<32x32xbf16>, vector<32x64xbf16>, vector<32x64xf32> -> vector<32x64xf32>
    %125 = arith.addf %117, %124 : vector<32x64xf32>
    %c3_107 = arith.constant 3 : index
    %c0_108 = arith.constant 0 : index
    %c0_109 = arith.constant 0 : index
    %126 = vector.load %arg4[%c3_107, %c0_108, %c0_109] : memref<9x256x64xbf16, #tpu.memory_space<vmem>>, vector<1x256x64xbf16>
    %127 = vector.shape_cast %126 : vector<1x256x64xbf16> to vector<256x64xbf16>
    %cst_110 = arith.constant dense<0.000000e+00> : vector<32x64xf32>
    %128 = tpu.matmul %100, %127, %cst_110 {dimension_numbers = #tpu.dot_dimension_numbers<[1], [0], [0], [1], [0, 0, 1, 1], [], []>} : vector<32x256xbf16>, vector<256x64xbf16>, vector<32x64xf32> -> vector<32x64xf32>
    %c3_111 = arith.constant 3 : index
    %c0_112 = arith.constant 0 : index
    %c0_113 = arith.constant 0 : index
    %129 = vector.load %arg5[%c3_111, %c0_112, %c0_113] : memref<9x32x32xbf16, #tpu.memory_space<vmem>>, vector<1x32x32xbf16>
    %130 = vector.shape_cast %129 : vector<1x32x32xbf16> to vector<32x32xbf16>
    %131 = arith.truncf %128 : vector<32x64xf32> to vector<32x64xbf16>
    %cst_114 = arith.constant dense<0.000000e+00> : vector<32x64xf32>
    %132 = tpu.matmul %130, %131, %cst_114 {dimension_numbers = #tpu.dot_dimension_numbers<[1], [0], [0], [1], [0, 0, 1, 1], [], []>} : vector<32x32xbf16>, vector<32x64xbf16>, vector<32x64xf32> -> vector<32x64xf32>
    %133 = arith.addf %125, %132 : vector<32x64xf32>
    %c4_115 = arith.constant 4 : index
    %c0_116 = arith.constant 0 : index
    %c0_117 = arith.constant 0 : index
    %134 = vector.load %arg4[%c4_115, %c0_116, %c0_117] : memref<9x256x64xbf16, #tpu.memory_space<vmem>>, vector<1x256x64xbf16>
    %135 = vector.shape_cast %134 : vector<1x256x64xbf16> to vector<256x64xbf16>
    %cst_118 = arith.constant dense<0.000000e+00> : vector<32x64xf32>
    %136 = tpu.matmul %100, %135, %cst_118 {dimension_numbers = #tpu.dot_dimension_numbers<[1], [0], [0], [1], [0, 0, 1, 1], [], []>} : vector<32x256xbf16>, vector<256x64xbf16>, vector<32x64xf32> -> vector<32x64xf32>
    %c4_119 = arith.constant 4 : index
    %c0_120 = arith.constant 0 : index
    %c0_121 = arith.constant 0 : index
    %137 = vector.load %arg5[%c4_119, %c0_120, %c0_121] : memref<9x32x32xbf16, #tpu.memory_space<vmem>>, vector<1x32x32xbf16>
    %138 = vector.shape_cast %137 : vector<1x32x32xbf16> to vector<32x32xbf16>
    %139 = arith.truncf %136 : vector<32x64xf32> to vector<32x64xbf16>
    %cst_122 = arith.constant dense<0.000000e+00> : vector<32x64xf32>
    %140 = tpu.matmul %138, %139, %cst_122 {dimension_numbers = #tpu.dot_dimension_numbers<[1], [0], [0], [1], [0, 0, 1, 1], [], []>} : vector<32x32xbf16>, vector<32x64xbf16>, vector<32x64xf32> -> vector<32x64xf32>
    %141 = arith.addf %133, %140 : vector<32x64xf32>
    %c5_123 = arith.constant 5 : index
    %c0_124 = arith.constant 0 : index
    %c0_125 = arith.constant 0 : index
    %142 = vector.load %arg4[%c5_123, %c0_124, %c0_125] : memref<9x256x64xbf16, #tpu.memory_space<vmem>>, vector<1x256x64xbf16>
    %143 = vector.shape_cast %142 : vector<1x256x64xbf16> to vector<256x64xbf16>
    %cst_126 = arith.constant dense<0.000000e+00> : vector<32x64xf32>
    %144 = tpu.matmul %100, %143, %cst_126 {dimension_numbers = #tpu.dot_dimension_numbers<[1], [0], [0], [1], [0, 0, 1, 1], [], []>} : vector<32x256xbf16>, vector<256x64xbf16>, vector<32x64xf32> -> vector<32x64xf32>
    %c5_127 = arith.constant 5 : index
    %c0_128 = arith.constant 0 : index
    %c0_129 = arith.constant 0 : index
    %145 = vector.load %arg5[%c5_127, %c0_128, %c0_129] : memref<9x32x32xbf16, #tpu.memory_space<vmem>>, vector<1x32x32xbf16>
    %146 = vector.shape_cast %145 : vector<1x32x32xbf16> to vector<32x32xbf16>
    %147 = arith.truncf %144 : vector<32x64xf32> to vector<32x64xbf16>
    %cst_130 = arith.constant dense<0.000000e+00> : vector<32x64xf32>
    %148 = tpu.matmul %146, %147, %cst_130 {dimension_numbers = #tpu.dot_dimension_numbers<[1], [0], [0], [1], [0, 0, 1, 1], [], []>} : vector<32x32xbf16>, vector<32x64xbf16>, vector<32x64xf32> -> vector<32x64xf32>
    %149 = arith.addf %141, %148 : vector<32x64xf32>
    %c6_131 = arith.constant 6 : index
    %c0_132 = arith.constant 0 : index
    %c0_133 = arith.constant 0 : index
    %150 = vector.load %arg4[%c6_131, %c0_132, %c0_133] : memref<9x256x64xbf16, #tpu.memory_space<vmem>>, vector<1x256x64xbf16>
    %151 = vector.shape_cast %150 : vector<1x256x64xbf16> to vector<256x64xbf16>
    %cst_134 = arith.constant dense<0.000000e+00> : vector<32x64xf32>
    %152 = tpu.matmul %100, %151, %cst_134 {dimension_numbers = #tpu.dot_dimension_numbers<[1], [0], [0], [1], [0, 0, 1, 1], [], []>} : vector<32x256xbf16>, vector<256x64xbf16>, vector<32x64xf32> -> vector<32x64xf32>
    %c6_135 = arith.constant 6 : index
    %c0_136 = arith.constant 0 : index
    %c0_137 = arith.constant 0 : index
    %153 = vector.load %arg5[%c6_135, %c0_136, %c0_137] : memref<9x32x32xbf16, #tpu.memory_space<vmem>>, vector<1x32x32xbf16>
    %154 = vector.shape_cast %153 : vector<1x32x32xbf16> to vector<32x32xbf16>
    %155 = arith.truncf %152 : vector<32x64xf32> to vector<32x64xbf16>
    %cst_138 = arith.constant dense<0.000000e+00> : vector<32x64xf32>
    %156 = tpu.matmul %154, %155, %cst_138 {dimension_numbers = #tpu.dot_dimension_numbers<[1], [0], [0], [1], [0, 0, 1, 1], [], []>} : vector<32x32xbf16>, vector<32x64xbf16>, vector<32x64xf32> -> vector<32x64xf32>
    %157 = arith.addf %149, %156 : vector<32x64xf32>
    %c7_139 = arith.constant 7 : index
    %c0_140 = arith.constant 0 : index
    %c0_141 = arith.constant 0 : index
    %158 = vector.load %arg4[%c7_139, %c0_140, %c0_141] : memref<9x256x64xbf16, #tpu.memory_space<vmem>>, vector<1x256x64xbf16>
    %159 = vector.shape_cast %158 : vector<1x256x64xbf16> to vector<256x64xbf16>
    %cst_142 = arith.constant dense<0.000000e+00> : vector<32x64xf32>
    %160 = tpu.matmul %100, %159, %cst_142 {dimension_numbers = #tpu.dot_dimension_numbers<[1], [0], [0], [1], [0, 0, 1, 1], [], []>} : vector<32x256xbf16>, vector<256x64xbf16>, vector<32x64xf32> -> vector<32x64xf32>
    %c7_143 = arith.constant 7 : index
    %c0_144 = arith.constant 0 : index
    %c0_145 = arith.constant 0 : index
    %161 = vector.load %arg5[%c7_143, %c0_144, %c0_145] : memref<9x32x32xbf16, #tpu.memory_space<vmem>>, vector<1x32x32xbf16>
    %162 = vector.shape_cast %161 : vector<1x32x32xbf16> to vector<32x32xbf16>
    %163 = arith.truncf %160 : vector<32x64xf32> to vector<32x64xbf16>
    %cst_146 = arith.constant dense<0.000000e+00> : vector<32x64xf32>
    %164 = tpu.matmul %162, %163, %cst_146 {dimension_numbers = #tpu.dot_dimension_numbers<[1], [0], [0], [1], [0, 0, 1, 1], [], []>} : vector<32x32xbf16>, vector<32x64xbf16>, vector<32x64xf32> -> vector<32x64xf32>
    %165 = arith.addf %157, %164 : vector<32x64xf32>
    %c8_147 = arith.constant 8 : index
    %c0_148 = arith.constant 0 : index
    %c0_149 = arith.constant 0 : index
    %166 = vector.load %arg4[%c8_147, %c0_148, %c0_149] : memref<9x256x64xbf16, #tpu.memory_space<vmem>>, vector<1x256x64xbf16>
    %167 = vector.shape_cast %166 : vector<1x256x64xbf16> to vector<256x64xbf16>
    %cst_150 = arith.constant dense<0.000000e+00> : vector<32x64xf32>
    %168 = tpu.matmul %100, %167, %cst_150 {dimension_numbers = #tpu.dot_dimension_numbers<[1], [0], [0], [1], [0, 0, 1, 1], [], []>} : vector<32x256xbf16>, vector<256x64xbf16>, vector<32x64xf32> -> vector<32x64xf32>
    %c8_151 = arith.constant 8 : index
    %c0_152 = arith.constant 0 : index
    %c0_153 = arith.constant 0 : index
    %169 = vector.load %arg5[%c8_151, %c0_152, %c0_153] : memref<9x32x32xbf16, #tpu.memory_space<vmem>>, vector<1x32x32xbf16>
    %170 = vector.shape_cast %169 : vector<1x32x32xbf16> to vector<32x32xbf16>
    %171 = arith.truncf %168 : vector<32x64xf32> to vector<32x64xbf16>
    %cst_154 = arith.constant dense<0.000000e+00> : vector<32x64xf32>
    %172 = tpu.matmul %170, %171, %cst_154 {dimension_numbers = #tpu.dot_dimension_numbers<[1], [0], [0], [1], [0, 0, 1, 1], [], []>} : vector<32x32xbf16>, vector<32x64xbf16>, vector<32x64xf32> -> vector<32x64xf32>
    %173 = arith.addf %165, %172 : vector<32x64xf32>
    %c0_155 = arith.constant 0 : index
    %c0_156 = arith.constant 0 : index
    %174 = vector.load %arg6[%c0_155, %c0_156] : memref<32x1xf32, #tpu.memory_space<vmem>>, vector<32x1xf32>
    %175 = vector.broadcast %174 : vector<32x1xf32> to vector<32x64xf32>
    %176 = arith.addf %173, %175 : vector<32x64xf32>
    %cst_157 = arith.constant 0.000000e+00 : f32
    %177 = vector.broadcast %cst_157 : f32 to vector<32x64xf32>
    %178 = arith.maximumf %176, %177 : vector<32x64xf32>
    %179 = math.absf %176 : vector<32x64xf32>
    %cst_158 = arith.constant 0.000000e+00 : f32
    %180 = vector.broadcast %cst_158 : f32 to vector<32x64xf32>
    %181 = arith.subf %180, %179 : vector<32x64xf32>
    %182 = math.exp %181 : vector<32x64xf32>
    %183 = math.log1p %182 : vector<32x64xf32>
    %184 = arith.addf %178, %183 : vector<32x64xf32>
    %185 = math.tanh %184 : vector<32x64xf32>
    %186 = arith.mulf %176, %185 : vector<32x64xf32>
    %c1_159 = arith.constant 1 : index
    %c0_160 = arith.constant 0 : index
    %c0_161 = arith.constant 0 : index
    %187 = vector.load %arg3[%c1_159, %c0_160, %c0_161] : memref<2x32x16xf32, #tpu.memory_space<vmem>>, vector<1x32x16xf32>
    %188 = vector.shape_cast %187 : vector<1x32x16xf32> to vector<32x16xf32>
    %189 = arith.truncf %188 : vector<32x16xf32> to vector<32x16xbf16>
    %c0_162 = arith.constant 0 : index
    %c0_163 = arith.constant 0 : index
    %190 = vector.load %arg7[%c0_162, %c0_163] : memref<16x64xbf16, #tpu.memory_space<vmem>>, vector<16x64xbf16>
    %cst_164 = arith.constant dense<0.000000e+00> : vector<32x64xf32>
    %191 = tpu.matmul %189, %190, %cst_164 {dimension_numbers = #tpu.dot_dimension_numbers<[1], [0], [0], [1], [0, 0, 1, 1], [], []>} : vector<32x16xbf16>, vector<16x64xbf16>, vector<32x64xf32> -> vector<32x64xf32>
    %c1_165 = arith.constant 1 : index
    %c0_166 = arith.constant 0 : index
    %c0_167 = arith.constant 0 : index
    %192 = vector.load %arg2[%c1_165, %c0_166, %c0_167] : memref<2x32x64xf32, #tpu.memory_space<vmem>>, vector<1x32x64xf32>
    %193 = vector.shape_cast %192 : vector<1x32x64xf32> to vector<32x64xf32>
    %194 = arith.addf %186, %193 : vector<32x64xf32>
    %195 = arith.addf %194, %191 : vector<32x64xf32>
    %196 = tpu.concatenate %97, %195 in 1 : vector<32x64xf32>, vector<32x64xf32> -> vector<32x128xf32>
    %c0_168 = arith.constant 0 : index
    %c0_169 = arith.constant 0 : index
    %c0_170 = arith.constant 0 : index
    %197 = vector.load %arg8[%c0_168, %c0_169, %c0_170] : memref<1x32x128xf32, #tpu.memory_space<vmem>>, vector<1x32x128xf32>
    %198 = vector.shape_cast %197 : vector<1x32x128xf32> to vector<32x128xf32>
    %199 = vector.shape_cast %196 : vector<32x128xf32> to vector<1x32x128xf32>
    tpu.vector_store %arg8[%c0_168, %c0_169, %c0_170], %199 {strides = array<i32>} : memref<1x32x128xf32, #tpu.memory_space<vmem>>, vector<1x32x128xf32>,
    return
  }
  func.func @transform_0(%arg0: i32) -> (i32, i32, i32) {
    %c0_i32 = arith.constant 0 : i32
    %c0_i32_0 = arith.constant 0 : i32
    %c0_i32_1 = arith.constant 0 : i32
    return %arg0, %c0_i32, %c0_i32_0 : i32, i32, i32
  }
  func.func @transform_1(%arg0: i32) -> (i32, i32, i32) {
    %c0_i32 = arith.constant 0 : i32
    %c0_i32_0 = arith.constant 0 : i32
    %c0_i32_1 = arith.constant 0 : i32
    return %arg0, %c0_i32, %c0_i32_0 : i32, i32, i32
  }
  func.func @transform_2(%arg0: i32) -> (i32, i32, i32) {
    %c0_i32 = arith.constant 0 : i32
    %c0_i32_0 = arith.constant 0 : i32
    %c0_i32_1 = arith.constant 0 : i32
    return %arg0, %c0_i32, %c0_i32_0 : i32, i32, i32
  }
  func.func @transform_3(%arg0: i32) -> (i32, i32, i32) {
    %c0_i32 = arith.constant 0 : i32
    %c0_i32_0 = arith.constant 0 : i32
    %c0_i32_1 = arith.constant 0 : i32
    %c0_i32_2 = arith.constant 0 : i32
    return %c0_i32, %c0_i32_0, %c0_i32_1 : i32, i32, i32
  }
  func.func @transform_4(%arg0: i32) -> (i32, i32, i32) {
    %c0_i32 = arith.constant 0 : i32
    %c0_i32_0 = arith.constant 0 : i32
    %c0_i32_1 = arith.constant 0 : i32
    %c0_i32_2 = arith.constant 0 : i32
    return %c0_i32, %c0_i32_0, %c0_i32_1 : i32, i32, i32
  }
  func.func @transform_5(%arg0: i32) -> (i32, i32) {
    %c0_i32 = arith.constant 0 : i32
    %c0_i32_0 = arith.constant 0 : i32
    %c0_i32_1 = arith.constant 0 : i32
    return %c0_i32, %c0_i32_0 : i32, i32
  }
  func.func @transform_6(%arg0: i32) -> (i32, i32) {
    %c0_i32 = arith.constant 0 : i32
    %c0_i32_0 = arith.constant 0 : i32
    %c0_i32_1 = arith.constant 0 : i32
    return %c0_i32, %c0_i32_0 : i32, i32
  }
  func.func @transform_7(%arg0: i32) -> (i32, i32, i32) {
    %c0_i32 = arith.constant 0 : i32
    %c0_i32_0 = arith.constant 0 : i32
    %c0_i32_1 = arith.constant 0 : i32
    return %arg0, %c0_i32, %c0_i32_0 : i32, i32, i32
  }
}

</mosaic_0001>

<bundles_post_ra>
// kernel: dens_fuse_forward.1
= control target key start
LH: loop header
LB: loop body
LE: loop exit
PB: predicated region body
PF: predicated region fallthrough
CT: control target
= control target key end

     0   :  { %vm395_vm0 = vcmask 261120   ;;  %vm2057_vm1 = vcmask 130048   ;;  %s4128_s13 = smov 64   ;;  %vm2800_vm9 = vcmask 523264   ;;  %s5613_s3 = inlined_call_operand.vmem [shape: bf16[9,256,64], index: 3, kind: input, shape index: {}]   ;;  %s5614_s0 = inlined_call_operand.vmem [shape: f32[2,32,256], index: 0, kind: input, shape index: {}]   ;;  %s5615_s4 = inlined_call_operand.vmem [shape: bf16[9,32,32], index: 4, kind: input, shape index: {}]   ;;  %s5616_s6 = inlined_call_operand.vmem [shape: bf16[16,64], index: 6, kind: input, shape index: {}]   ;;  %s5617_s5 = inlined_call_operand.vmem [shape: f32[32,1], index: 5, kind: input, shape index: {}]   ;;  %s5618_s2 = inlined_call_operand.vmem [shape: f32[2,32,16], index: 2, kind: input, shape index: {}]   ;;  %s5619_s1 = inlined_call_operand.vmem [shape: f32[2,32,64], index: 1, kind: input, shape index: {}]   ;;  %s5620_s7 = inlined_call_operand.vmem [shape: f32[1,32,128], index: 7, kind: output, shape index: {}]  }
   0x1   :  { %v4172_v0 = vld [vmem:[%s5613_s3 + $0x38] sm:$0xff]  ;;  %v4190_v4 = vld [vmem:[%s5613_s3 + $0x30] sm:$0xff]  ;;  %v4208_v8 = vld [vmem:[%s5613_s3 + $0x28] sm:$0xff] }
   0x2   :  { %v4177_v1 = vld [vmem:[%s5613_s3 + $0x78] sm:$0xff]  ;;  %167 = vmatpush.bf16.msra.mxu0 %v4172_v0  ;;  %v4195_v5 = vld [vmem:[%s5613_s3 + $0x70] sm:$0xff]  ;;  %v4213_v9 = vld [vmem:[%s5613_s3 + $0x68] sm:$0xff] }
   0x3   :  { %v3834_v2 = vld [vmem:[%s5613_s3 + $0xb8] sm:$0xff]  ;;  %186 = vmatpush.bf16.msra.mxu1 %v4177_v1  ;;  %v3833_v6 = vld [vmem:[%s5613_s3 + $0xb0] sm:$0xff]  ;;  %v3832_v10 = vld [vmem:[%s5613_s3 + $0xa8] sm:$0xff] }
   0x4   :  { %v3842_v3 = vld [vmem:[%s5613_s3 + $0xf8] sm:$0xff]  ;;  %340 = vmatpush.bf16.msra.mxu2 %v3834_v2  ;;  %v3841_v7 = vld [vmem:[%s5613_s3 + $0xf0] sm:$0xff]  ;;  %v3840_v11 = vld [vmem:[%s5613_s3 + $0xe8] sm:$0xff] }
   0x5   :  { %359 = vmatpush.bf16.msra.mxu3 %v3842_v3  ;;  %v4226_v12 = vld [vmem:[%s5613_s3 + $0x20] sm:$0xff]  ;;  %v4244_v16 = vld [vmem:[%s5613_s3 + $0x18] sm:$0xff]  ;;  %v4262_v20 = vld [vmem:[%s5613_s3 + $0x10] sm:$0xff] }
   0x6   :  { %168 = vmatpush.bf16.msra.mxu0 %v4190_v4  ;;  %v4231_v13 = vld [vmem:[%s5613_s3 + $0x60] sm:$0xff]  ;;  %v4249_v17 = vld [vmem:[%s5613_s3 + $0x58] sm:$0xff]  ;;  %v4267_v21 = vld [vmem:[%s5613_s3 + $0x50] sm:$0xff] }
   0x7   :  { %187 = vmatpush.bf16.msra.mxu1 %v4195_v5  ;;  %v3831_v14 = vld [vmem:[%s5613_s3 + $0xa0] sm:$0xff]  ;;  %v3830_v18 = vld [vmem:[%s5613_s3 + $0x98] sm:$0xff]  ;;  %v3829_v22 = vld [vmem:[%s5613_s3 + $0x90] sm:$0xff] }
   0x8   :  { %341 = vmatpush.bf16.msra.mxu2 %v3833_v6  ;;  %v3839_v15 = vld [vmem:[%s5613_s3 + $0xe0] sm:$0xff]  ;;  %v3838_v19 = vld [vmem:[%s5613_s3 + $0xd8] sm:$0xff]  ;;  %v3837_v23 = vld [vmem:[%s5613_s3 + $0xd0] sm:$0xff] }
   0x9   :  { %360 = vmatpush.bf16.msra.mxu3 %v3841_v7  ;;  %v4280_v24 = vld [vmem:[%s5613_s3 + $0x8] sm:$0xff]  ;;  %v4296_v28 = vld [vmem:[%s5613_s3] sm:$0xff]  ;;  %v29_v31 = vld [vmem:[%s5614_s0 + $0x10] sm:$0xff] }
   0xa   :  { %169 = vmatpush.bf16.msra.mxu0 %v4208_v8  ;;  %v4285_v25 = vld [vmem:[%s5613_s3 + $0x48] sm:$0xff]  ;;  %v4301_v29 = vld [vmem:[%s5613_s3 + $0x40] sm:$0xff]  ;;  %v30_v33 = vld [vmem:[%s5614_s0 + $0x18] sm:$0xff] }
   0xb   :  { %188 = vmatpush.bf16.msra.mxu1 %v4213_v9  ;;  %v3828_v26 = vld [vmem:[%s5613_s3 + $0x88] sm:$0xff]  ;;  %v27_v30 = vld [vmem:[%s5614_s0] sm:$0xff]  ;;  %v3852_v36 = vld [vmem:[%s5613_s3 + $0x138] sm:$0xff] }
   0xc   :  { %342 = vmatpush.bf16.msra.mxu2 %v3832_v10  ;;  %v3836_v27 = vld [vmem:[%s5613_s3 + $0xc8] sm:$0xff]  ;;  %v3827_v34 = vld [vmem:[%s5613_s3 + $0x80] sm:$0xff]  ;;  %v3860_v37 = vld [vmem:[%s5613_s3 + $0x178] sm:$0xff]  ;;  %v4329_v38 = vpack.c.bf16 %v29_v31, %v27_v30 }
   0xd   :  { %361 = vmatpush.bf16.msra.mxu3 %v3840_v11  ;;  %v28_v32 = vld [vmem:[%s5614_s0 + $0x8] sm:$0xff]  ;;  %v3835_v35 = vld [vmem:[%s5613_s3 + $0xc0] sm:$0xff]  ;;  %v3851_v40 = vld [vmem:[%s5613_s3 + $0x130] sm:$0xff] }
   0xe   :  { %170 = vmatpush.bf16.msra.mxu0 %v4226_v12  ;;  %v4331_v39 = vpack.c.bf16 %v30_v33, %v28_v32  ;;  %v3859_v41 = vld [vmem:[%s5613_s3 + $0x170] sm:$0xff]  ;;  %v3850_v42 = vld [vmem:[%s5613_s3 + $0x128] sm:$0xff]  ;;  %v3849_v44 = vld [vmem:[%s5613_s3 + $0x120] sm:$0xff] }
   0xf   :  { %189 = vmatpush.bf16.msra.mxu1 %v4231_v13  ;;  %v3858_v43 = vld [vmem:[%s5613_s3 + $0x168] sm:$0xff]  ;;  %v3857_v45 = vld [vmem:[%s5613_s3 + $0x160] sm:$0xff]  ;;  %v33_v47 = vld [vmem:[%s5614_s0 + $0x30] sm:$0xff] }
  0x10   :  { %343 = vmatpush.bf16.msra.mxu2 %v3831_v14  ;;  %v31_v46 = vld [vmem:[%s5614_s0 + $0x20] sm:$0xff]  ;;  %v32_v48 = vld [vmem:[%s5614_s0 + $0x28] sm:$0xff]  ;;  %v34_v49 = vld [vmem:[%s5614_s0 + $0x38] sm:$0xff] }
  0x11   :  { %362 = vmatpush.bf16.msra.mxu3 %v3839_v15  ;;  %v3848_v50 = vld [vmem:[%s5613_s3 + $0x118] sm:$0xff]  ;;  %v4375_v52 = vpack.c.bf16 %v33_v47, %v31_v46  ;;  %v4377_v53 = vpack.c.bf16 %v34_v49, %v32_v48  ;;  %v3847_v54 = vld [vmem:[%s5613_s3 + $0x110] sm:$0xff]  ;;  %v3846_v56 = vld [vmem:[%s5613_s3 + $0x108] sm:$0xff] }
  0x12   :  { %171 = vmatpush.bf16.msra.mxu0 %v4244_v16  ;;  %v3856_v51 = vld [vmem:[%s5613_s3 + $0x158] sm:$0xff]  ;;  %v3855_v55 = vld [vmem:[%s5613_s3 + $0x150] sm:$0xff]  ;;  %v3854_v57 = vld [vmem:[%s5613_s3 + $0x148] sm:$0xff] }
  0x13   :  { %190 = vmatpush.bf16.msra.mxu1 %v4249_v17  ;;  %v3845_v58 = vld [vmem:[%s5613_s3 + $0x100] sm:$0xff]  ;;  %v3878_v60 = vld [vmem:[%s5613_s3 + $0x1f8] sm:$0xff]  ;;  %v3877_v63 = vld [vmem:[%s5613_s3 + $0x1f0] sm:$0xff] }
  0x14   :  { %344 = vmatpush.bf16.msra.mxu2 %v3830_v18  ;;  %v3853_v59 = vld [vmem:[%s5613_s3 + $0x140] sm:$0xff]  ;;  %v3876_v2 = vld [vmem:[%s5613_s3 + $0x1e8] sm:$0xff]  ;;  %v3874_v14 = vld [vmem:[%s5613_s3 + $0x1d8] sm:$0xff] }
  0x15   :  { %363 = vmatpush.bf16.msra.mxu3 %v3838_v19  ;;  %v3875_v11 = vld [vmem:[%s5613_s3 + $0x1e0] sm:$0xff] }
  0x16   :  { %172 = vmatpush.bf16.msra.mxu0 %v4262_v20  ;;  %v3871_v33 = vld [vmem:[%s5613_s3 + $0x1c0] sm:$0xff] }
  0x17   :  { %191 = vmatpush.bf16.msra.mxu1 %v4267_v21  ;;  %v4438_v47 = vld [vmem:[%s5615_s4] sm:$0xff] }
  0x18   :  { %345 = vmatpush.bf16.msra.mxu2 %v3829_v22 }
  0x19   :  { %364 = vmatpush.bf16.msra.mxu3 %v3837_v23  ;;  %v3873_v23 = vld [vmem:[%s5613_s3 + $0x1d0] sm:$0xff] }
  0x1a   :  { %173 = vmatpush.bf16.msra.mxu0 %v4280_v24 }
  0x1b   :  { %192 = vmatpush.bf16.msra.mxu1 %v4285_v25 }
  0x1c   :  { %346 = vmatpush.bf16.msra.mxu2 %v3828_v26  ;;  %v3872_v26 = vld [vmem:[%s5613_s3 + $0x1c8] sm:$0xff] }
  0x1d   :  { %365 = vmatpush.bf16.msra.mxu3 %v3836_v27 }
  0x1e   :  { %174 = vmatpush.bf16.msra.mxu0 %v4296_v28 }
  0x1f   :  { %193 = vmatpush.bf16.msra.mxu1 %v4301_v29 }
  0x20   :  { %347 = vmatpush.bf16.msra.mxu2 %v3827_v34 }
  0x21   :  { %366 = vmatpush.bf16.msra.mxu3 %v3835_v35  ;;  %175 = vmatmul.bf16.vlgmr.msra.gmra.mxu0 %v4329_v38 }
  0x22   :  { %194 = vmatmul.bf16.vlgmr.msra.gmra.mxu1 %v4331_v39 }
  0x23   :  { %348 = vmatmul.bf16.vlgmr.msra.gmra.mxu2 %v4329_v38 }
  0x24   :  { %585 = vmatpush.bf16.msrb.mxu2 %v3852_v36  ;;  %367 = vmatmul.bf16.vlgmr.msra.gmra.mxu3 %v4331_v39 }
  0x25   :  { %604 = vmatpush.bf16.msrb.mxu3 %v3860_v37 }
  0x28   :  { %586 = vmatpush.bf16.msrb.mxu2 %v3851_v40 }
  0x29   :  { %605 = vmatpush.bf16.msrb.mxu3 %v3859_v41  ;;  %v4433_v41 = vld [vmem:[%s5613_s3 + $0x1b8] sm:$0xff] }
  0x2c   :  { %587 = vmatpush.bf16.msrb.mxu2 %v3850_v42 }
  0x2d   :  { %606 = vmatpush.bf16.msrb.mxu3 %v3858_v43 }
  0x30   :  { %588 = vmatpush.bf16.msrb.mxu2 %v3849_v44 }
  0x31   :  { %607 = vmatpush.bf16.msrb.mxu3 %v3857_v45  ;;  %180 = vmatmul.bf16.gmra.mxu0 %v4375_v52 }
  0x32   :  { %199 = vmatmul.bf16.gmra.mxu1 %v4377_v53 }
  0x33   :  { %353 = vmatmul.bf16.gmra.mxu2 %v4375_v52 }
  0x34   :  { %589 = vmatpush.bf16.msrb.mxu2 %v3848_v50  ;;  %372 = vmatmul.bf16.gmra.mxu3 %v4377_v53  ;;  %v4444_v50 = vld [vmem:[%s5613_s3 + $0x1b0] sm:$0xff] }
  0x35   :  { %608 = vmatpush.bf16.msrb.mxu3 %v3856_v51 }
  0x38   :  { %590 = vmatpush.bf16.msrb.mxu2 %v3847_v54 }
  0x39   :  { %609 = vmatpush.bf16.msrb.mxu3 %v3855_v55  ;;  %v4452_v55 = vld [vmem:[%s5613_s3 + $0x1a8] sm:$0xff] }
  0x3c   :  { %591 = vmatpush.bf16.msrb.mxu2 %v3846_v56 }
  0x3d   :  { %610 = vmatpush.bf16.msrb.mxu3 %v3854_v57 }
  0x40   :  { %592 = vmatpush.bf16.msrb.mxu2 %v3845_v58  ;;  %v3843_v58 = vld [vmem:[%s5615_s4 + $0x10] sm:$0xff] }
  0x41   :  { %611 = vmatpush.bf16.msrb.mxu3 %v3853_v59  ;;  %v4461_v59 = vld [vmem:[%s5613_s3 + $0x1a0] sm:$0xff] }
  0x43   :  { %593 = vmatmul.bf16.vlgmr.msrb.gmra.mxu2 %v4329_v38 }
  0x44   :  { %612 = vmatmul.bf16.vlgmr.msrb.gmra.mxu3 %v4331_v39  ;;  %817 = vmatpush.bf16.msra.mxu2 %v3878_v60  ;;  %v4469_v60 = vld [vmem:[%s5613_s3 + $0x198] sm:$0xff] }
  0x48   :  { %818 = vmatpush.bf16.msra.mxu2 %v3877_v63  ;;  %v4474_v63 = vld [vmem:[%s5615_s4 + $0x8] sm:$0xff] }
  0x4c   :  { %819 = vmatpush.bf16.msra.mxu2 %v3876_v2  ;;  %v4480_v2 = vld [vmem:[%s5613_s3 + $0x190] sm:$0xff] }
  0x50   :  { %820 = vmatpush.bf16.msra.mxu2 %v3875_v11  ;;  %v4497_v11 = vld [vmem:[%s5613_s3 + $0x180] sm:$0xff] }
  0x53   :  { %598 = vmatmul.bf16.gmra.mxu2 %v4375_v52 }
  0x54   :  { %617 = vmatmul.bf16.gmra.mxu3 %v4377_v53  ;;  %821 = vmatpush.bf16.msra.mxu2 %v3874_v14  ;;  %v4503_v14 = vld [vmem:[%s5613_s3 + $0x278] sm:$0xff] }
  0x58   :  { %822 = vmatpush.bf16.msra.mxu2 %v3873_v23 }
  0x5c   :  { %823 = vmatpush.bf16.msra.mxu2 %v3872_v26 }
  0x60   :  { %824 = vmatpush.bf16.msra.mxu2 %v3871_v33 }
  0x63   :  { %825 = vmatmul.bf16.vlgmr.msra.gmra.mxu2 %v4331_v39 }
  0x73   :  { %830 = vmatmul.bf16.gmra.mxu2 %v4377_v53 }
  0x9e   :  { %v176_v61 = vpop.f32.mrf.mxu0 }
  0x9f   :  { %v195_v62 = vpop.f32.mrf.mxu1 }
  0xa0   :  { %v196_v40 = vadd.f32 %v195_v62, %v176_v61 }
  0xa6   :  { %v349_v3 = vpop.f32.mrf.mxu2  ;;  %v178_v7 = vpop.f32.mrf.mxu0 }
  0xa7   :  { %v368_v6 = vpop.f32.mrf.mxu3  ;;  %v197_v10 = vpop.f32.mrf.mxu1 }
  0xa8   :  { %v198_v36 = vadd.f32 %v197_v10, %v178_v7  ;;  %v369_v51 = vadd.f32 %v368_v6, %v349_v3  ;;  %v4488_v3 = vld [vmem:[%s5613_s3 + $0x188] sm:$0xff]  ;;  %v3844_v10 = vld [vmem:[%s5615_s4 + $0x18] sm:$0xff] }
  0xaa   :  { %v209_v44 = vpack.c.bf16 %v198_v36, %v196_v40  ;;  %v3887_v36 = vld [vmem:[%s5613_s3 + $0x230] sm:$0xff]  ;;  %v3886_v40 = vld [vmem:[%s5613_s3 + $0x228] sm:$0xff] }
  0xae   :  { %v351_v15 = vpop.f32.mrf.mxu2  ;;  %v181_v19 = vpop.f32.mrf.mxu0 }
  0xaf   :  { %v370_v18 = vpop.f32.mrf.mxu3  ;;  %v200_v22 = vpop.f32.mrf.mxu1 }
  0xb0   :  { %v201_v34 = vadd.f32 %v200_v22, %v181_v19  ;;  %v371_v48 = vadd.f32 %v370_v18, %v351_v15  ;;  %v4510_v19 = vld [vmem:[%s5613_s3 + $0x270] sm:$0xff] }
  0xb2   :  { %v383_v54 = vpack.c.bf16 %v371_v48, %v369_v51  ;;  %v4570_v48 = vld [vmem:[%s5613_s3 + $0x240] sm:$0xff]  ;;  %v3882_v51 = vld [vmem:[%s5613_s3 + $0x208] sm:$0xff] }
  0xb6   :  { %v354_v27 = vpop.f32.mrf.mxu2  ;;  %v183_v31 = vpop.f32.mrf.mxu0 }
  0xb7   :  { %v373_v30 = vpop.f32.mrf.mxu3  ;;  %v202_v32 = vpop.f32.mrf.mxu1 }
  0xb8   :  { %v203_v35 = vadd.f32 %v202_v32, %v183_v31  ;;  %v374_v45 = vadd.f32 %v373_v30, %v354_v27  ;;  %v4516_v30 = vld [vmem:[%s5613_s3 + $0x268] sm:$0xff]  ;;  %v3888_v32 = vld [vmem:[%s5613_s3 + $0x238] sm:$0xff] }
  0xba   :  { %v210_v37 = vpack.c.bf16 %v203_v35, %v201_v34  ;;  %v3861_v34 = vld [vmem:[%s5615_s4 + $0x20] sm:$0xff] }
  0xbb   :  { %v4529_v35 = vld [vmem:[%s5613_s3 + $0x260] sm:$0xff] }
  0xbc   :  { %443 = vmatpush.bf16.msrb.mxu1 %v210_v37  ;;  %v4539_v37 = vld [vmem:[%s5613_s3 + $0x258] sm:$0xff] }
  0xbe   :  { %v356_v42 = vpop.f32.mrf.mxu2 }
  0xbf   :  { %v375_v43 = vpop.f32.mrf.mxu3 }
  0xc0   :  { %v376_v46 = vadd.f32 %v375_v43, %v356_v42  ;;  %444 = vmatpush.bf16.msrb.mxu1 %v209_v44  ;;  %v4548_v42 = vld [vmem:[%s5613_s3 + $0x250] sm:$0xff]  ;;  %v3885_v43 = vld [vmem:[%s5613_s3 + $0x220] sm:$0xff]  ;;  %v4557_v44 = vld [vmem:[%s5613_s3 + $0x248] sm:$0xff] }
  0xc2   :  { %v384_v49 = vpack.c.bf16 %v376_v46, %v374_v45  ;;  %v3884_v45 = vld [vmem:[%s5613_s3 + $0x218] sm:$0xff]  ;;  %v3862_v46 = vld [vmem:[%s5615_s4 + $0x28] sm:$0xff] }
  0xc3   :  { %2995 = vmatmul.msk.bf16.vlgmr.msrb.gmra.mxu1 %vm395_vm0, %v4438_v47 }
  0xc4   :  { %798 = vmatpush.bf16.msra.mxu1 %v4433_v41  ;;  %408 = vmatpush.bf16.msrb.mxu0 %v384_v49  ;;  %v3883_v49 = vld [vmem:[%s5613_s3 + $0x210] sm:$0xff] }
  0xc6   :  { %v594_v56 = vpop.f32.mrf.mxu2 }
  0xc7   :  { %v613_v57 = vpop.f32.mrf.mxu3 }
  0xc8   :  { %799 = vmatpush.bf16.msra.mxu1 %v4444_v50  ;;  %409 = vmatpush.bf16.msrb.mxu0 %v383_v54  ;;  %v614_v31 = vadd.f32 %v613_v57, %v594_v56  ;;  %v3881_v54 = vld [vmem:[%s5613_s3 + $0x200] sm:$0xff] }
  0xcb   :  { %2985 = vmatmul.msk.bf16.vlgmr.msrb.gmra.mxu0 %vm395_vm0, %v3843_v58 }
  0xcc   :  { %800 = vmatpush.bf16.msra.mxu1 %v4452_v55 }
  0xce   :  { %v596_v61 = vpop.f32.mrf.mxu2 }
  0xcf   :  { %v615_v62 = vpop.f32.mrf.mxu3 }
  0xd0   :  { %801 = vmatpush.bf16.msra.mxu1 %v4461_v59  ;;  %v616_v26 = vadd.f32 %v615_v62, %v596_v61 }
  0xd2   :  { %v628_v33 = vpack.c.bf16 %v616_v26, %v614_v31 }
  0xd3   :  { %2996 = vmatmul.msk.bf16.gmra.mxu1 %vm395_vm0, %v4474_v63 }
  0xd4   :  { %802 = vmatpush.bf16.msra.mxu1 %v4469_v60 }
  0xd6   :  { %v599_v6 = vpop.f32.mrf.mxu2 }
  0xd7   :  { %v618_v7 = vpop.f32.mrf.mxu3 }
  0xd8   :  { %803 = vmatpush.bf16.msra.mxu1 %v4480_v2  ;;  %v619_v22 = vadd.f32 %v618_v7, %v599_v6 }
  0xdb   :  { %2986 = vmatmul.msk.bf16.gmra.mxu0 %vm395_vm0, %v3844_v10 }
  0xdc   :  { %804 = vmatpush.bf16.msra.mxu1 %v4488_v3 }
  0xde   :  { %v601_v15 = vpop.f32.mrf.mxu2 }
  0xdf   :  { %v620_v18 = vpop.f32.mrf.mxu3 }
  0xe0   :  { %805 = vmatpush.bf16.msra.mxu1 %v4497_v11  ;;  %v621_v23 = vadd.f32 %v620_v18, %v601_v15 }
  0xe2   :  { %v629_v27 = vpack.c.bf16 %v621_v23, %v619_v22 }
  0xe3   :  { %806 = vmatmul.bf16.vlgmr.msra.gmra.mxu1 %v4329_v38 }
  0xe4   :  { %1030 = vmatpush.bf16.msrb.mxu1 %v4503_v14  ;;  %652 = vmatpush.bf16.msra.mxu0 %v629_v27 }
  0xe6   :  { %v826_v18 = vpop.f32.mrf.mxu2 }
  0xe8   :  { %1031 = vmatpush.bf16.msrb.mxu1 %v4510_v19  ;;  %653 = vmatpush.bf16.msra.mxu0 %v628_v33  ;;  %v3914_v33 = vld [vmem:[%s5613_s3 + $0x2f8] sm:$0xff] }
  0xeb   :  { %3105 = vmatmul.msk.bf16.vlgmr.msra.gmra.mxu0 %vm395_vm0, %v3861_v34  ;;  %v3913_v34 = vld [vmem:[%s5613_s3 + $0x2f0] sm:$0xff] }
  0xec   :  { %1032 = vmatpush.bf16.msrb.mxu1 %v4516_v30  ;;  %1011 = vmatpush.bf16.msrb.mxu0 %v3888_v32 }
  0xee   :  { %v828_v26 = vpop.f32.mrf.mxu2 }
  0xf0   :  { %1033 = vmatpush.bf16.msrb.mxu1 %v4529_v35  ;;  %1012 = vmatpush.bf16.msrb.mxu0 %v3887_v36 }
  0xf3   :  { %811 = vmatmul.bf16.gmra.mxu1 %v4375_v52 }
  0xf4   :  { %1034 = vmatpush.bf16.msrb.mxu1 %v4539_v37  ;;  %1013 = vmatpush.bf16.msrb.mxu0 %v3886_v40 }
  0xf6   :  { %v831_v36 = vpop.f32.mrf.mxu2 }
  0xf8   :  { %1035 = vmatpush.bf16.msrb.mxu1 %v4548_v42  ;;  %1014 = vmatpush.bf16.msrb.mxu0 %v3885_v43 }
  0xfb   :  { %3106 = vmatmul.msk.bf16.gmra.mxu0 %vm395_vm0, %v3862_v46  ;;  %v3911_v46 = vld [vmem:[%s5613_s3 + $0x2e0] sm:$0xff] }
  0xfc   :  { %1036 = vmatpush.bf16.msrb.mxu1 %v4557_v44  ;;  %1015 = vmatpush.bf16.msrb.mxu0 %v3884_v45  ;;  %v3912_v45 = vld [vmem:[%s5613_s3 + $0x2e8] sm:$0xff] }
 0x100   :  { %1037 = vmatpush.bf16.msrb.mxu1 %v4570_v48  ;;  %1016 = vmatpush.bf16.msrb.mxu0 %v3883_v49 }
 0x103   :  { %1038 = vmatmul.bf16.vlgmr.msrb.gmra.mxu1 %v4331_v39 }
 0x104   :  { %1017 = vmatpush.bf16.msrb.mxu0 %v3882_v51 }
 0x108   :  { %1018 = vmatpush.bf16.msrb.mxu0 %v3881_v54  ;;  %v833_v54 = vpop.f32.mrf.mxu2 }
 0x10b   :  { %1019 = vmatmul.bf16.vlgmr.msrb.gmra.mxu0 %v4329_v38 }
 0x10c   :  { %1243 = vmatpush.bf16.msra.mxu0 %v3914_v33 }
 0x110   :  { %1244 = vmatpush.bf16.msra.mxu0 %v3913_v34 }
 0x113   :  { %1043 = vmatmul.bf16.gmra.mxu1 %v4377_v53 }
 0x114   :  { %1245 = vmatpush.bf16.msra.mxu0 %v3912_v45 }
 0x118   :  { %1246 = vmatpush.bf16.msra.mxu0 %v3911_v46 }
 0x11b   :  { %1024 = vmatmul.bf16.gmra.mxu0 %v4375_v52 }
 0x140   :  { %v446_v56 = vpop.f32.mrf.mxu1 }
 0x148   :  { %v411_v57 = vpop.f32.mrf.mxu0  ;;  %v4587_v61 = vpop.f32.mrf.mxu1 }
 0x149   :  { %v447_v58 = vadd.f32 %v446_v56, %v411_v57  ;;  %5628 = vst [vmem:[#allocation2_spill] sm:$0xff] %v4587_v61  ;;  %v3910_v57 = vld [vmem:[%s5613_s3 + $0x2d8] sm:$0xff]  ;;  %v3915_v61 = vld [vmem:[%s5615_s4 + $0x50] sm:$0xff] }
 0x14a   :  { %1247 = vmatpush.bf16.msra.mxu0 %v3910_v57  ;;  %v3902_v57 = vld [vmem:[%s5613_s3 + $0x298] sm:$0xff] }
 0x150   :  { %v4589_v62 = vpop.f32.mrf.mxu0  ;;  %v451_v6 = vpop.f32.mrf.mxu1 }
 0x151   :  { %5629 = vst [vmem:[#allocation3_spill] sm:$0xff] %v4589_v62 }
 0x158   :  { %v416_v7 = vpop.f32.mrf.mxu0  ;;  %v4591_v15 = vpop.f32.mrf.mxu1 }
 0x159   :  { %v452_v10 = vadd.f32 %v451_v6, %v416_v7  ;;  %5630 = vst [vmem:[#allocation4_spill] sm:$0xff] %v4591_v15  ;;  %v3909_v7 = vld [vmem:[%s5613_s3 + $0x2d0] sm:$0xff] }
 0x15a   :  { %1248 = vmatpush.bf16.msra.mxu0 %v3909_v7  ;;  %v3901_v7 = vld [vmem:[%s5613_s3 + $0x290] sm:$0xff] }
 0x160   :  { %v4593_v22 = vpop.f32.mrf.mxu0  ;;  %v807_v23 = vpop.f32.mrf.mxu1 }
 0x161   :  { %5631 = vst [vmem:[#allocation5_spill] sm:$0xff] %v4593_v22  ;;  %v827_v34 = vadd.f32 %v826_v18, %v807_v23  ;;  %v3905_v18 = vld [vmem:[%s5613_s3 + $0x2b0] sm:$0xff]  ;;  %v3907_v23 = vld [vmem:[%s5613_s3 + $0x2c0] sm:$0xff] }
 0x168   :  { %v655_v27 = vpop.f32.mrf.mxu0  ;;  %v809_v32 = vpop.f32.mrf.mxu1 }
 0x169   :  { %v4595_v31 = vadd.f32 %v655_v27, %v447_v58  ;;  %v829_v27 = vadd.f32 %v828_v26, %v809_v32  ;;  %v3904_v32 = vld [vmem:[%s5613_s3 + $0x2a8] sm:$0xff] }
 0x16b   :  { %v841_v45 = vpack.c.bf16 %v829_v27, %v827_v34 }
 0x170   :  { %v4603_v40 = vpop.f32.mrf.mxu0  ;;  %v812_v43 = vpop.f32.mrf.mxu1 }
 0x171   :  { %5632 = vst [vmem:[#allocation6_spill] sm:$0xff] %v4603_v40  ;;  %v832_v58 = vadd.f32 %v831_v36, %v812_v43  ;;  %v3879_v36 = vld [vmem:[%s5615_s4 + $0x30] sm:$0xff]  ;;  %v3908_v43 = vld [vmem:[%s5613_s3 + $0x2c8] sm:$0xff] }
 0x172   :  { %1249 = vmatpush.bf16.msra.mxu0 %v3908_v43 }
 0x176   :  { %1250 = vmatpush.bf16.msra.mxu0 %v3907_v23 }
 0x178   :  { %v660_v49 = vpop.f32.mrf.mxu0  ;;  %v814_v56 = vpop.f32.mrf.mxu1 }
 0x179   :  { %v4611_v51 = vadd.f32 %v660_v49, %v452_v10  ;;  %v834_v6 = vadd.f32 %v833_v54, %v814_v56  ;;  %v3906_v10 = vld [vmem:[%s5613_s3 + $0x2b8] sm:$0xff]  ;;  %1251 = vmatmul.bf16.vlgmr.msra.gmra.mxu0 %v4331_v39  ;;  %v3903_v54 = vld [vmem:[%s5613_s3 + $0x2a0] sm:$0xff] }
 0x17b   :  { %v842_v33 = vpack.c.bf16 %v834_v6, %v832_v58  ;;  %v3880_v6 = vld [vmem:[%s5615_s4 + $0x38] sm:$0xff] }
 0x17d   :  { %865 = vmatpush.bf16.msra.mxu3 %v842_v33  ;;  %v3900_v33 = vld [vmem:[%s5613_s3 + $0x288] sm:$0xff] }
 0x180   :  { %v4622_v46 = vpop.f32.mrf.mxu0  ;;  %v1039_v26 = vpop.f32.mrf.mxu1 }
 0x181   :  { %5633 = vst [vmem:[#allocation7_spill] sm:$0xff] %v4622_v46  ;;  %866 = vmatpush.bf16.msra.mxu3 %v841_v45  ;;  %v3932_v45 = vld [vmem:[%s5613_s3 + $0x378] sm:$0xff] }
 0x184   :  { %3215 = vmatmul.msk.bf16.vlgmr.msra.gmra.mxu3 %vm395_vm0, %v3879_v36 }
 0x185   :  { %1224 = vmatpush.bf16.msrb.mxu3 %v3906_v10  ;;  %v3899_v10 = vld [vmem:[%s5613_s3 + $0x280] sm:$0xff] }
 0x188   :  { %v1020_v49 = vpop.f32.mrf.mxu0  ;;  %v1041_v56 = vpop.f32.mrf.mxu1 }
 0x189   :  { %1225 = vmatpush.bf16.msrb.mxu3 %v3905_v18  ;;  %1256 = vmatmul.bf16.gmra.mxu0 %v4377_v53  ;;  %v3931_v18 = vld [vmem:[%s5613_s3 + $0x370] sm:$0xff] }
 0x18d   :  { %1226 = vmatpush.bf16.msrb.mxu3 %v3904_v32 }
 0x190   :  { %v1022_v58 = vpop.f32.mrf.mxu0  ;;  %v1044_v27 = vpop.f32.mrf.mxu1 }
 0x191   :  { %1227 = vmatpush.bf16.msrb.mxu3 %v3903_v54  ;;  %v1042_v54 = vadd.f32 %v1041_v56, %v1022_v58  ;;  %v4680_v56 = vld [vmem:[%s5613_s3 + $0x360] sm:$0xff]  ;;  %v3922_v58 = vld [vmem:[%s5613_s3 + $0x328] sm:$0xff] }
 0x194   :  { %3216 = vmatmul.msk.bf16.gmra.mxu3 %vm395_vm0, %v3880_v6  ;;  %v3930_v6 = vld [vmem:[%s5613_s3 + $0x368] sm:$0xff] }
 0x195   :  { %1228 = vmatpush.bf16.msrb.mxu3 %v3902_v57 }
 0x198   :  { %v1025_v34 = vpop.f32.mrf.mxu0  ;;  %v1046_v36 = vpop.f32.mrf.mxu1 }
 0x199   :  { %1229 = vmatpush.bf16.msrb.mxu3 %v3901_v7  ;;  %v1045_v23 = vadd.f32 %v1044_v27, %v1025_v34  ;;  %v1040_v7 = vadd.f32 %v1039_v26, %v1020_v49  ;;  %v3897_v27 = vld [vmem:[%s5615_s4 + $0x40] sm:$0xff]  ;;  %v3923_v26 = vld [vmem:[%s5613_s3 + $0x330] sm:$0xff]  ;;  %v4690_v49 = vld [vmem:[%s5613_s3 + $0x358] sm:$0xff] }
 0x19a   :  { %v4699_v34 = vld [vmem:[%s5613_s3 + $0x350] sm:$0xff] }
 0x19d   :  { %1230 = vmatpush.bf16.msrb.mxu3 %v3900_v33  ;;  %v3924_v33 = vld [vmem:[%s5613_s3 + $0x338] sm:$0xff] }
 0x1a0   :  { %v1027_v43 = vpop.f32.mrf.mxu0 }
 0x1a1   :  { %1231 = vmatpush.bf16.msrb.mxu3 %v3899_v10  ;;  %v1047_v32 = vadd.f32 %v1046_v36, %v1027_v43  ;;  %v1054_v10 = vpack.c.bf16 %v1042_v54, %v1040_v7  ;;  %v4708_v36 = vld [vmem:[%s5613_s3 + $0x348] sm:$0xff]  ;;  %v3920_v43 = vld [vmem:[%s5613_s3 + $0x318] sm:$0xff] }
 0x1a2   :  { %v3918_v54 = vld [vmem:[%s5613_s3 + $0x308] sm:$0xff] }
 0x1a3   :  { %v1055_v57 = vpack.c.bf16 %v1047_v32, %v1045_v23  ;;  %v4721_v23 = vld [vmem:[%s5613_s3 + $0x340] sm:$0xff]  ;;  %v3919_v32 = vld [vmem:[%s5613_s3 + $0x310] sm:$0xff] }
 0x1a4   :  { %1232 = vmatmul.bf16.vlgmr.msrb.gmra.mxu3 %v4329_v38 }
 0x1a5   :  { %1456 = vmatpush.bf16.msra.mxu3 %v3932_v45  ;;  %1078 = vmatpush.bf16.msrb.mxu2 %v1055_v57  ;;  %v3921_v45 = vld [vmem:[%s5613_s3 + $0x320] sm:$0xff] }
 0x1a6   :  { %v3917_v57 = vld [vmem:[%s5613_s3 + $0x300] sm:$0xff] }
 0x1a9   :  { %1457 = vmatpush.bf16.msra.mxu3 %v3931_v18  ;;  %1079 = vmatpush.bf16.msrb.mxu2 %v1054_v10  ;;  %v3898_v18 = vld [vmem:[%s5615_s4 + $0x48] sm:$0xff] }
 0x1ac   :  { %3325 = vmatmul.msk.bf16.vlgmr.msrb.gmra.mxu2 %vm395_vm0, %v3897_v27 }
 0x1ad   :  { %1458 = vmatpush.bf16.msra.mxu3 %v3930_v6  ;;  %1437 = vmatpush.bf16.msra.mxu2 %v3924_v33 }
 0x1b1   :  { %1459 = vmatpush.bf16.msra.mxu3 %v4680_v56  ;;  %1438 = vmatpush.bf16.msra.mxu2 %v3923_v26 }
 0x1b4   :  { %1237 = vmatmul.bf16.gmra.mxu3 %v4375_v52 }
 0x1b5   :  { %1460 = vmatpush.bf16.msra.mxu3 %v4690_v49  ;;  %1439 = vmatpush.bf16.msra.mxu2 %v3922_v58 }
 0x1b9   :  { %1461 = vmatpush.bf16.msra.mxu3 %v4699_v34  ;;  %1440 = vmatpush.bf16.msra.mxu2 %v3921_v45  ;;  %v3950_v45 = vld [vmem:[%s5613_s3 + $0x3f8] sm:$0xff] }
 0x1bc   :  { %3326 = vmatmul.msk.bf16.gmra.mxu2 %vm395_vm0, %v3898_v18  ;;  %v3949_v18 = vld [vmem:[%s5613_s3 + $0x3f0] sm:$0xff] }
 0x1bd   :  { %1462 = vmatpush.bf16.msra.mxu3 %v4708_v36  ;;  %1441 = vmatpush.bf16.msra.mxu2 %v3920_v43 }
 0x1c1   :  { %1463 = vmatpush.bf16.msra.mxu3 %v4721_v23  ;;  %1442 = vmatpush.bf16.msra.mxu2 %v3919_v32  ;;  %v3948_v32 = vld [vmem:[%s5613_s3 + $0x3e8] sm:$0xff] }
 0x1c4   :  { %1464 = vmatmul.bf16.vlgmr.msra.gmra.mxu3 %v4331_v39 }
 0x1c5   :  { %1443 = vmatpush.bf16.msra.mxu2 %v3918_v54 }
 0x1c9   :  { %1444 = vmatpush.bf16.msra.mxu2 %v3917_v57 }
 0x1cc   :  { %1445 = vmatmul.bf16.vlgmr.msra.gmra.mxu2 %v4329_v38 }
 0x1cd   :  { %1669 = vmatpush.bf16.msrb.mxu2 %v3950_v45 }
 0x1d1   :  { %1670 = vmatpush.bf16.msrb.mxu2 %v3949_v18 }
 0x1d4   :  { %1469 = vmatmul.bf16.gmra.mxu3 %v4377_v53 }
 0x1d5   :  { %1671 = vmatpush.bf16.msrb.mxu2 %v3948_v32  ;;  %v3944_v32 = vld [vmem:[%s5613_s3 + $0x3c8] sm:$0xff] }
 0x1dc   :  { %1450 = vmatmul.bf16.gmra.mxu2 %v4375_v52 }
 0x1f6   :  { %v1252_v58 = vpop.f32.mrf.mxu0 }
 0x207   :  { %v868_v6 = vpop.f32.mrf.mxu3 }
 0x208   :  { %v878_v7 = vadd.f32 %v868_v6, %v4595_v31  ;;  %v1254_v31 = vpop.f32.mrf.mxu0  ;;  %v3947_v6 = vld [vmem:[%s5613_s3 + $0x3e0] sm:$0xff] }
 0x209   :  { %1672 = vmatpush.bf16.msrb.mxu2 %v3947_v6 }
 0x20f   :  { %v4739_v33 = vpop.f32.mrf.mxu3 }
 0x210   :  { %5634 = vst [vmem:[#allocation8_spill] sm:$0xff] %v4739_v33  ;;  %v1257_v45 = vpop.f32.mrf.mxu0 }
 0x217   :  { %v873_v10 = vpop.f32.mrf.mxu3 }
 0x218   :  { %v880_v27 = vadd.f32 %v873_v10, %v4611_v51  ;;  %v3946_v10 = vld [vmem:[%s5613_s3 + $0x3d8] sm:$0xff]  ;;  %v1259_v46 = vpop.f32.mrf.mxu0 }
 0x219   :  { %1673 = vmatpush.bf16.msrb.mxu2 %v3946_v10  ;;  %v3943_v10 = vld [vmem:[%s5613_s3 + $0x3c0] sm:$0xff] }
 0x21f   :  { %v4742_v26 = vpop.f32.mrf.mxu3 }
 0x220   :  { %5635 = vst [vmem:[#allocation9_spill] sm:$0xff] %v4742_v26 }
 0x227   :  { %v1233_v43 = vpop.f32.mrf.mxu3 }
 0x22f   :  { %v1081_v51 = vpop.f32.mrf.mxu2  ;;  %v1235_v57 = vpop.f32.mrf.mxu3 }
 0x230   :  { %v4753_v54 = vadd.f32 %v1081_v51, %v878_v7  ;;  %v3945_v7 = vld [vmem:[%s5613_s3 + $0x3d0] sm:$0xff]  ;;  %v1255_v33 = vadd.f32 %v1254_v31, %v1235_v57 }
 0x231   :  { %1674 = vmatpush.bf16.msrb.mxu2 %v3945_v7  ;;  %v1253_v7 = vadd.f32 %v1252_v58, %v1233_v43  ;;  %v4811_v43 = vld [vmem:[%s5615_s4 + $0x58] sm:$0xff]  ;;  %v4817_v31 = vld [vmem:[%s5613_s3 + $0x390] sm:$0xff] }
 0x232   :  { %5640 = vst [vmem:[#allocation14_spill] sm:$0xff] %v4811_v43 }
 0x233   :  { %5641 = vst [vmem:[#allocation15_spill] sm:$0xff] %v4817_v31 }
 0x235   :  { %1675 = vmatpush.bf16.msrb.mxu2 %v3944_v32  ;;  %v1267_v32 = vpack.c.bf16 %v1255_v33, %v1253_v7  ;;  %v4836_v7 = vld [vmem:[%s5613_s3 + $0x478] sm:$0xff] }
 0x236   :  { %5644 = vst [vmem:[#allocation18_spill] sm:$0xff] %v4836_v7 }
 0x237   :  { %v4761_v18 = vpop.f32.mrf.mxu2  ;;  %v1238_v26 = vpop.f32.mrf.mxu3 }
 0x238   :  { %5636 = vst [vmem:[#allocation10_spill] sm:$0xff] %v4761_v18  ;;  %v1258_v22 = vadd.f32 %v1257_v45, %v1238_v26  ;;  %v4825_v45 = vld [vmem:[%s5613_s3 + $0x388] sm:$0xff] }
 0x239   :  { %1676 = vmatpush.bf16.msrb.mxu2 %v3943_v10  ;;  %5642 = vst [vmem:[#allocation16_spill] sm:$0xff] %v4825_v45  ;;  %v4831_v10 = vld [vmem:[%s5613_s3 + $0x380] sm:$0xff] }
 0x23a   :  { %5643 = vst [vmem:[#allocation17_spill] sm:$0xff] %v4831_v10 }
 0x23c   :  { %1677 = vmatmul.bf16.vlgmr.msrb.gmra.mxu2 %v4331_v39 }
 0x23f   :  { %v1086_v51 = vpop.f32.mrf.mxu2  ;;  %v1240_v15 = vpop.f32.mrf.mxu3 }
 0x240   :  { %v4769_v6 = vadd.f32 %v1086_v51, %v880_v27  ;;  %v1260_v18 = vadd.f32 %v1259_v46, %v1240_v15  ;;  %v3942_v27 = vld [vmem:[%s5613_s3 + $0x3b8] sm:$0xff]  ;;  %v4786_v15 = vld [vmem:[%s5613_s3 + $0x3b0] sm:$0xff]  ;;  %v4799_v46 = vld [vmem:[%s5613_s3 + $0x3a0] sm:$0xff] }
 0x241   :  { %5638 = vst [vmem:[#allocation12_spill] sm:$0xff] %v4799_v46 }
 0x242   :  { %v1268_v40 = vpack.c.bf16 %v1260_v18, %v1258_v22  ;;  %v4793_v22 = vld [vmem:[%s5613_s3 + $0x3a8] sm:$0xff] }
 0x244   :  { %1291 = vmatpush.bf16.msra.mxu1 %v1268_v40 }
 0x247   :  { %v4778_v51 = vpop.f32.mrf.mxu2  ;;  %v1465_v26 = vpop.f32.mrf.mxu3 }
 0x248   :  { %5637 = vst [vmem:[#allocation11_spill] sm:$0xff] %v4778_v51  ;;  %1292 = vmatpush.bf16.msra.mxu1 %v1267_v32  ;;  %v4843_v51 = vld [vmem:[%s5613_s3 + $0x470] sm:$0xff] }
 0x24b   :  { %3435 = vmatmul.msk.bf16.vlgmr.msra.gmra.mxu1 %vm395_vm0, %v3915_v61  ;;  %v4806_v61 = vld [vmem:[%s5613_s3 + $0x398] sm:$0xff] }
 0x24c   :  { %1650 = vmatpush.bf16.msrb.mxu1 %v3942_v27  ;;  %1682 = vmatmul.bf16.gmra.mxu2 %v4377_v53  ;;  %5639 = vst [vmem:[#allocation13_spill] sm:$0xff] %v4806_v61 }
 0x24f   :  { %v1446_v40 = vpop.f32.mrf.mxu2  ;;  %v1467_v33 = vpop.f32.mrf.mxu3 }
 0x250   :  { %1651 = vmatpush.bf16.msrb.mxu1 %v4786_v15 }
 0x254   :  { %1652 = vmatpush.bf16.msrb.mxu1 %v4793_v22 }
 0x257   :  { %v1448_v58 = vpop.f32.mrf.mxu2  ;;  %v1470_v57 = vpop.f32.mrf.mxu3 }
 0x258   :  { %1653 = vmatpush.bf16.msrb.mxu1 %v4799_v46 }
 0x25b   :  { %3436 = vmatmul.msk.bf16.gmra.mxu1 %vm395_vm0, %v4811_v43 }
 0x25c   :  { %1654 = vmatpush.bf16.msrb.mxu1 %v4806_v61  ;;  %v4849_v61 = vld [vmem:[%s5613_s3 + $0x468] sm:$0xff] }
 0x25f   :  { %v1451_v18 = vpop.f32.mrf.mxu2  ;;  %v1472_v27 = vpop.f32.mrf.mxu3 }
 0x260   :  { %1655 = vmatpush.bf16.msrb.mxu1 %v4817_v31  ;;  %v1471_v62 = vadd.f32 %v1470_v57, %v1451_v18  ;;  %v1468_v31 = vadd.f32 %v1467_v33, %v1448_v58  ;;  %v4862_v33 = vld [vmem:[%s5613_s3 + $0x460] sm:$0xff]  ;;  %v3958_v58 = vld [vmem:[%s5613_s3 + $0x428] sm:$0xff]  ;;  %v3956_v57 = vld [vmem:[%s5613_s3 + $0x418] sm:$0xff] }
 0x261   :  { %v4903_v18 = vld [vmem:[%s5613_s3 + $0x440] sm:$0xff] }
 0x264   :  { %1656 = vmatpush.bf16.msrb.mxu1 %v4825_v45 }
 0x267   :  { %v1453_v32 = vpop.f32.mrf.mxu2 }
 0x268   :  { %1657 = vmatpush.bf16.msrb.mxu1 %v4831_v10  ;;  %v1473_v45 = vadd.f32 %v1472_v27, %v1453_v32  ;;  %v1466_v10 = vadd.f32 %v1465_v26, %v1446_v40  ;;  %v3959_v26 = vld [vmem:[%s5613_s3 + $0x430] sm:$0xff]  ;;  %v4872_v40 = vld [vmem:[%s5613_s3 + $0x458] sm:$0xff]  ;;  %v3953_v27 = vld [vmem:[%s5613_s3 + $0x400] sm:$0xff] }
 0x26a   :  { %v1481_v43 = vpack.c.bf16 %v1473_v45, %v1471_v62  ;;  %v1480_v46 = vpack.c.bf16 %v1468_v31, %v1466_v10  ;;  %v3933_v62 = vld [vmem:[%s5615_s4 + $0x60] sm:$0xff]  ;;  %v4890_v31 = vld [vmem:[%s5613_s3 + $0x448] sm:$0xff]  ;;  %v3955_v10 = vld [vmem:[%s5613_s3 + $0x410] sm:$0xff] }
 0x26b   :  { %1658 = vmatmul.bf16.vlgmr.msrb.gmra.mxu1 %v4329_v38  ;;  %v3934_v45 = vld [vmem:[%s5615_s4 + $0x68] sm:$0xff] }
 0x26c   :  { %1882 = vmatpush.bf16.msra.mxu1 %v4836_v7  ;;  %1504 = vmatpush.bf16.msrb.mxu0 %v1481_v43  ;;  %v3960_v7 = vld [vmem:[%s5613_s3 + $0x438] sm:$0xff]  ;;  %v3957_v43 = vld [vmem:[%s5613_s3 + $0x420] sm:$0xff] }
 0x270   :  { %1883 = vmatpush.bf16.msra.mxu1 %v4843_v51  ;;  %1505 = vmatpush.bf16.msrb.mxu0 %v1480_v46  ;;  %v4881_v46 = vld [vmem:[%s5613_s3 + $0x450] sm:$0xff] }
 0x273   :  { %3545 = vmatmul.msk.bf16.vlgmr.msrb.gmra.mxu0 %vm395_vm0, %v3933_v62 }
 0x274   :  { %1884 = vmatpush.bf16.msra.mxu1 %v4849_v61  ;;  %1863 = vmatpush.bf16.msra.mxu0 %v3960_v7  ;;  %v3954_v7 = vld [vmem:[%s5613_s3 + $0x408] sm:$0xff] }
 0x278   :  { %1885 = vmatpush.bf16.msra.mxu1 %v4862_v33  ;;  %1864 = vmatpush.bf16.msra.mxu0 %v3959_v26 }
 0x27b   :  { %1663 = vmatmul.bf16.gmra.mxu1 %v4375_v52 }
 0x27c   :  { %1886 = vmatpush.bf16.msra.mxu1 %v4872_v40  ;;  %1865 = vmatpush.bf16.msra.mxu0 %v3958_v58 }
 0x280   :  { %1887 = vmatpush.bf16.msra.mxu1 %v4881_v46  ;;  %1866 = vmatpush.bf16.msra.mxu0 %v3957_v43 }
 0x283   :  { %3546 = vmatmul.msk.bf16.gmra.mxu0 %vm395_vm0, %v3934_v45 }
 0x284   :  { %1888 = vmatpush.bf16.msra.mxu1 %v4890_v31  ;;  %1867 = vmatpush.bf16.msra.mxu0 %v3956_v57 }
 0x288   :  { %1889 = vmatpush.bf16.msra.mxu1 %v4903_v18  ;;  %1868 = vmatpush.bf16.msra.mxu0 %v3955_v10 }
 0x28b   :  { %1890 = vmatmul.bf16.vlgmr.msra.gmra.mxu1 %v4331_v39 }
 0x28c   :  { %2127 = vmatpush.bf16.msrb.mxu1 %v4177_v1  ;;  %1869 = vmatpush.bf16.msra.mxu0 %v3954_v7  ;;  %v3775_v1 = vld [vmem:[%s5614_s0 + $0x50] sm:$0xff] }
 0x290   :  { %2128 = vmatpush.bf16.msrb.mxu1 %v4195_v5  ;;  %1870 = vmatpush.bf16.msra.mxu0 %v3953_v27 }
 0x293   :  { %1871 = vmatmul.bf16.vlgmr.msra.gmra.mxu0 %v4329_v38 }
 0x294   :  { %2129 = vmatpush.bf16.msrb.mxu1 %v4213_v9  ;;  %2108 = vmatpush.bf16.msrb.mxu0 %v4172_v0  ;;  %v3773_v0 = vld [vmem:[%s5614_s0 + $0x40] sm:$0xff] }
 0x295   :  { %v4945_v5 = vpack.c.bf16 %v3775_v1, %v3773_v0 }
 0x298   :  { %2130 = vmatpush.bf16.msrb.mxu1 %v4231_v13  ;;  %2109 = vmatpush.bf16.msrb.mxu0 %v4190_v4  ;;  %v3774_v4 = vld [vmem:[%s5614_s0 + $0x48] sm:$0xff]  ;;  %v3779_v13 = vld [vmem:[%s5614_s0 + $0x70] sm:$0xff] }
 0x29b   :  { %1895 = vmatmul.bf16.gmra.mxu1 %v4377_v53 }
 0x29c   :  { %2131 = vmatpush.bf16.msrb.mxu1 %v4249_v17  ;;  %2110 = vmatpush.bf16.msrb.mxu0 %v4208_v8  ;;  %v3776_v8 = vld [vmem:[%s5614_s0 + $0x58] sm:$0xff] }
 0x29d   :  { %v4950_v9 = vpack.c.bf16 %v3776_v8, %v3774_v4 }
 0x2a0   :  { %2132 = vmatpush.bf16.msrb.mxu1 %v4267_v21  ;;  %2111 = vmatpush.bf16.msrb.mxu0 %v4226_v12  ;;  %v3777_v12 = vld [vmem:[%s5614_s0 + $0x60] sm:$0xff] }
 0x2a1   :  { %v4963_v17 = vpack.c.bf16 %v3779_v13, %v3777_v12 }
 0x2a3   :  { %1876 = vmatmul.bf16.gmra.mxu0 %v4375_v52 }
 0x2a4   :  { %2133 = vmatpush.bf16.msrb.mxu1 %v4285_v25  ;;  %2112 = vmatpush.bf16.msrb.mxu0 %v4244_v16  ;;  %v3778_v16 = vld [vmem:[%s5614_s0 + $0x68] sm:$0xff] }
 0x2a8   :  { %2134 = vmatpush.bf16.msrb.mxu1 %v4301_v29  ;;  %2113 = vmatpush.bf16.msrb.mxu0 %v4262_v20  ;;  %v3780_v20 = vld [vmem:[%s5614_s0 + $0x78] sm:$0xff] }
 0x2a9   :  { %v4968_v21 = vpack.c.bf16 %v3780_v20, %v3778_v16  ;;  %v4989_v16 = vld [vmem:[%s5615_s4 + $0x70] sm:$0xff]  ;;  %v4994_v20 = vld [vmem:[%s5616_s6] sm:$0xff] }
 0x2ab   :  { %2135 = vmatmul.bf16.vlgmr.msrb.gmra.mxu1 %v4950_v9 }
 0x2ac   :  { %2114 = vmatpush.bf16.msrb.mxu0 %v4280_v24 }
 0x2b0   :  { %2115 = vmatpush.bf16.msrb.mxu0 %v4296_v28 }
 0x2b3   :  { %2116 = vmatmul.bf16.vlgmr.msrb.gmra.mxu0 %v4945_v5 }
 0x2bb   :  { %2140 = vmatmul.bf16.gmra.mxu1 %v4968_v21 }
 0x2bf   :  { %v1678_v52 = vpop.f32.mrf.mxu2 }
 0x2c3   :  { %2121 = vmatmul.bf16.gmra.mxu0 %v4963_v17 }
 0x2c7   :  { %v1680_v32 = vpop.f32.mrf.mxu2 }
 0x2c8   :  { %v1294_v24 = vpop.f32.mrf.mxu1 }
 0x2c9   :  { %v1304_v25 = vadd.f32 %v1294_v24, %v4753_v54 }
 0x2cf   :  { %v1683_v43 = vpop.f32.mrf.mxu2 }
 0x2d0   :  { %v4973_v28 = vpop.f32.mrf.mxu1 }
 0x2d7   :  { %v1685_v7 = vpop.f32.mrf.mxu2 }
 0x2d8   :  { %v1299_v29 = vpop.f32.mrf.mxu1 }
 0x2d9   :  { %v1306_v38 = vadd.f32 %v1299_v29, %v4769_v6 }
 0x2e0   :  { %v4976_v39 = vpop.f32.mrf.mxu1 }
 0x2e8   :  { %v1659_v53 = vpop.f32.mrf.mxu1 }
 0x2e9   :  { %v1679_v8 = vadd.f32 %v1678_v52, %v1659_v53  ;;  %v4026_v53 = vld [vmem:[%s5613_s3 + $0xe8] sm:$0xff] }
 0x2f0   :  { %v1507_v62 = vpop.f32.mrf.mxu0  ;;  %v1661_v58 = vpop.f32.mrf.mxu1 }
 0x2f1   :  { %v4978_v26 = vadd.f32 %v1507_v62, %v1304_v25  ;;  %v1681_v1 = vadd.f32 %v1680_v32, %v1661_v58  ;;  %v4024_v25 = vld [vmem:[%s5613_s3 + $0xf8] sm:$0xff]  ;;  %v4027_v58 = vld [vmem:[%s5613_s3 + $0xe0] sm:$0xff] }
 0x2f2   :  { %v5011_v62 = vld [vmem:[%s5615_s4 + $0x78] sm:$0xff] }
 0x2f3   :  { %v1693_v12 = vpack.c.bf16 %v1681_v1, %v1679_v8  ;;  %v2044_v1 = vld [vmem:[%s5618_s2 + $0x8] sm:$0xff] }
 0x2f8   :  { %v4980_v57 = vpop.f32.mrf.mxu0  ;;  %v1664_v45 = vpop.f32.mrf.mxu1 }
 0x2f9   :  { %v1684_v0 = vadd.f32 %v1683_v43, %v1664_v45  ;;  %v4028_v45 = vld [vmem:[%s5613_s3 + $0xd8] sm:$0xff] }
 0x300   :  { %v1512_v10 = vpop.f32.mrf.mxu0  ;;  %v1666_v27 = vpop.f32.mrf.mxu1 }
 0x301   :  { %v4982_v54 = vadd.f32 %v1512_v10, %v1306_v38  ;;  %v1686_v6 = vadd.f32 %v1685_v7, %v1666_v27  ;;  %v4025_v38 = vld [vmem:[%s5613_s3 + $0xf0] sm:$0xff]  ;;  %v1947_v27 = vld [vmem:[%s5617_s5] sm:$0xff] }
 0x302   :  { %v4029_v7 = vld [vmem:[%s5613_s3 + $0xd0] sm:$0xff] }
 0x303   :  { %v1694_v4 = vpack.c.bf16 %v1686_v6, %v1684_v0  ;;  %v4127_v0 = vmov 0   ;;  %v2043_v6 = vld [vmem:[%s5618_s2] sm:$0xff] }
 0x304   :  { %3974 = vset.pattern.permute.xlu0 %v4127_v0  ;;  %3975 = vset.pattern.permute.xlu1 %v4127_v0 }
 0x305   :  { %1717 = vmatpush.bf16.msrb.mxu3 %v1694_v4  ;;  %1953 = vperm.xlu0 %3974, %v1947_v27   ;;  %v4030_v4 = vld [vmem:[%s5613_s3 + $0xc8] sm:$0xff] }
 0x306   :  { %v1948_v27 = vld [vmem:[%s5617_s5 + $0x8] sm:$0xff] }
 0x308   :  { %v4984_v13 = vpop.f32.mrf.mxu0  ;;  %v1891_v24 = vpop.f32.mrf.mxu1 }
 0x309   :  { %1718 = vmatpush.bf16.msrb.mxu3 %v1693_v12 }
 0x30c   :  { %3655 = vmatmul.msk.bf16.vlgmr.msrb.gmra.mxu3 %vm395_vm0, %v4989_v16 }
 0x30d   :  { %2071 = vmatpush.bf16.msra.mxu3 %v4994_v20  ;;  %1958 = vperm.xlu0 %3974, %v1948_v27   ;;  %v4039_v27 = vld [vmem:[%s5613_s3 + $0xa0] sm:$0xff] }
 0x310   :  { %v1872_v29 = vpop.f32.mrf.mxu0  ;;  %v1893_v52 = vpop.f32.mrf.mxu1 }
 0x311   :  { %2167 = vmatpush.bf16.msrb.mxu3 %v4024_v25  ;;  %v1892_v0 = vadd.f32 %v1891_v24, %v1872_v29  ;;  %v4033_v24 = vld [vmem:[%s5613_s3 + $0xb8] sm:$0xff]  ;;  %v4034_v29 = vld [vmem:[%s5613_s3 + $0x170] sm:$0xff] }
 0x315   :  { %2168 = vmatpush.bf16.msrb.mxu3 %v4025_v38 }
 0x318   :  { %v1874_v32 = vpop.f32.mrf.mxu0  ;;  %v1896_v43 = vpop.f32.mrf.mxu1 }
 0x319   :  { %2169 = vmatpush.bf16.msrb.mxu3 %v4026_v53  ;;  %v2047_v53 = vpack.c.bf16 %v2044_v1, %v2043_v6  ;;  %v1949_v1 = vld [vmem:[%s5617_s5 + $0x10] sm:$0xff] }
 0x31a   :  { %1963 = vperm.xlu1 %3975, %v1949_v1  }
 0x31c   :  { %3656 = vmatmul.msk.bf16.gmra.mxu3 %vm395_vm0, %v5011_v62 }
 0x31d   :  { %2170 = vmatpush.bf16.msrb.mxu3 %v4027_v58  ;;  %v4031_v58 = vld [vmem:[%s5613_s3 + $0xc0] sm:$0xff] }
 0x320   :  { %v1877_v10 = vpop.f32.mrf.mxu0  ;;  %v1898_v8 = vpop.f32.mrf.mxu1 }
 0x321   :  { %2171 = vmatpush.bf16.msrb.mxu3 %v4028_v45  ;;  %v1897_v25 = vadd.f32 %v1896_v43, %v1877_v10  ;;  %v1894_v45 = vadd.f32 %v1893_v52, %v1874_v32  ;;  %v4032_v43 = vld [vmem:[%s5613_s3 + $0x178] sm:$0xff]  ;;  %v5049_v52 = vld [vmem:[%s5615_s4 + $0x80] sm:$0xff] }
 0x323   :  { %v1906_v10 = vpack.c.bf16 %v1894_v45, %v1892_v0  ;;  %v1950_v0 = vld [vmem:[%s5617_s5 + $0x18] sm:$0xff] }
 0x324   :  { %1968 = vperm.xlu1 %3975, %v1950_v0  }
 0x325   :  { %2172 = vmatpush.bf16.msrb.mxu3 %v4029_v7 }
 0x328   :  { %v1879_v12 = vpop.f32.mrf.mxu0  ;;  %v2136_v6 = vpop.f32.mrf.mxu1 }
 0x329   :  { %2173 = vmatpush.bf16.msrb.mxu3 %v4030_v4  ;;  %v1899_v38 = vadd.f32 %v1898_v8, %v1879_v12  ;;  %v4035_v4 = vld [vmem:[%s5613_s3 + $0xb0] sm:$0xff]  ;;  %v2046_v12 = vld [vmem:[%s5618_s2 + $0x18] sm:$0xff] }
 0x32a   :  { %v2045_v8 = vld [vmem:[%s5618_s2 + $0x10] sm:$0xff] }
 0x32b   :  { %v1907_v7 = vpack.c.bf16 %v1899_v38, %v1897_v25  ;;  %v4036_v25 = vld [vmem:[%s5613_s3 + $0x168] sm:$0xff]  ;;  %v2048_v38 = vpack.c.bf16 %v2046_v12, %v2045_v8  ;;  %v4043_v8 = vld [vmem:[%s5613_s3 + $0x90] sm:$0xff] }
 0x32c   :  { %3771 = vmatmul.msk.bf16.vlgmr.msra.gmra.mxu3 %vm2057_vm1, %v2047_v53  ;;  %v4037_v53 = vld [vmem:[%s5613_s3 + $0xa8] sm:$0xff] }
 0x32d   :  { %2174 = vmatpush.bf16.msrb.mxu3 %v4031_v58  ;;  %1930 = vmatpush.bf16.msra.mxu2 %v1907_v7  ;;  %v4038_v58 = vld [vmem:[%s5613_s3 + $0x160] sm:$0xff]  ;;  %v4044_v12 = vld [vmem:[%s5613_s3 + $0x148] sm:$0xff] }
 0x330   :  { %v2117_v32 = vpop.f32.mrf.mxu0  ;;  %v2138_v7 = vpop.f32.mrf.mxu1 }
 0x331   :  { %2245 = vmatpush.bf16.msra.mxu3 %v4032_v43  ;;  %1931 = vmatpush.bf16.msra.mxu2 %v1906_v10  ;;  %v4040_v43 = vld [vmem:[%s5613_s3 + $0x158] sm:$0xff]  ;;  %v5093_v10 = vld [vmem:[%s5615_s4 + $0x88] sm:$0xff] }
 0x334   :  { %3765 = vmatmul.msk.bf16.vlgmr.msra.gmra.mxu2 %vm395_vm0, %v5049_v52 }
 0x335   :  { %2148 = vmatpush.bf16.msrb.mxu2 %v4033_v24  ;;  %2246 = vmatpush.bf16.msra.mxu3 %v4034_v29  ;;  %v4041_v24 = vld [vmem:[%s5613_s3 + $0x98] sm:$0xff]  ;;  %v4042_v29 = vld [vmem:[%s5613_s3 + $0x150] sm:$0xff] }
 0x338   :  { %v2119_v45 = vpop.f32.mrf.mxu0 }
 0x339   :  { %2149 = vmatpush.bf16.msrb.mxu2 %v4035_v4  ;;  %2247 = vmatpush.bf16.msra.mxu3 %v4036_v25  ;;  %v2141_v4 = vpop.f32.mrf.mxu1  ;;  %v4045_v25 = vld [vmem:[%s5613_s3 + $0x88] sm:$0xff] }
 0x33c   :  { %3772 = vmatmul.msk.bf16.gmra.mxu3 %vm2057_vm1, %v2048_v38 }
 0x33d   :  { %2150 = vmatpush.bf16.msrb.mxu2 %v4037_v53  ;;  %2248 = vmatpush.bf16.msra.mxu3 %v4038_v58  ;;  %v4046_v53 = vld [vmem:[%s5613_s3 + $0x140] sm:$0xff] }
 0x340   :  { %v2122_v1 = vpop.f32.mrf.mxu0 }
 0x341   :  { %2151 = vmatpush.bf16.msrb.mxu2 %v4039_v27  ;;  %2249 = vmatpush.bf16.msra.mxu3 %v4040_v43  ;;  %v2142_v38 = vadd.f32 %v2141_v4, %v2122_v1  ;;  %v2143_v0 = vpop.f32.mrf.mxu1  ;;  %v2137_v27 = vadd.f32 %v2136_v6, %v2117_v32  ;;  %v2139_v43 = vadd.f32 %v2138_v7, %v2119_v45  ;;  %v4048_v1 = vld [vmem:[%s5613_s3 + $0x138] sm:$0xff]  ;;  %v4050_v32 = vld [vmem:[%s5613_s3 + $0x128] sm:$0xff]  ;;  %v4051_v6 = vld [vmem:[%s5613_s3 + $0x120] sm:$0xff] }
 0x344   :  { %3766 = vmatmul.msk.bf16.gmra.mxu2 %vm395_vm0, %v5093_v10 }
 0x345   :  { %2152 = vmatpush.bf16.msrb.mxu2 %v4041_v24  ;;  %2250 = vmatpush.bf16.msra.mxu3 %v4042_v29  ;;  %v4047_v29 = vld [vmem:[%s5613_s3 + $0x80] sm:$0xff] }
 0x348   :  { %v2124_v58 = vpop.f32.mrf.mxu0 }
 0x349   :  { %2153 = vmatpush.bf16.msrb.mxu2 %v4043_v8  ;;  %2251 = vmatpush.bf16.msra.mxu3 %v4044_v12  ;;  %v2144_v24 = vadd.f32 %v2143_v0, %v2124_v58  ;;  %v2146_v8 = vpack.c.bf16 %v2139_v43, %v2137_v27  ;;  %v4049_v12 = vld [vmem:[%s5613_s3 + $0x130] sm:$0xff] }
 0x34b   :  { %v2147_v4 = vpack.c.bf16 %v2144_v24, %v2142_v38 }
 0x34c   :  { %2175 = vmatmul.bf16.vlgmr.msrb.gmra.mxu3 %v4950_v9 }
 0x34d   :  { %2154 = vmatpush.bf16.msrb.mxu2 %v4045_v25  ;;  %2252 = vmatpush.bf16.msra.mxu3 %v4046_v53 }
 0x34e   :  { %2213 = vmatpush.bf16.msra.mxu1 %v2147_v4 }
 0x351   :  { %2155 = vmatpush.bf16.msrb.mxu2 %v4047_v29 }
 0x352   :  { %2214 = vmatpush.bf16.msra.mxu1 %v2146_v8 }
 0x354   :  { %2156 = vmatmul.bf16.vlgmr.msrb.gmra.mxu2 %v4945_v5 }
 0x355   :  { %2226 = vmatpush.bf16.msra.mxu2 %v4048_v1  ;;  %3783 = vmatmul.msk.bf16.vlgmr.msra.gmra.mxu1 %vm395_vm0, %v4438_v47  ;;  %v4053_v47 = vld [vmem:[%s5613_s3 + $0x110] sm:$0xff] }
 0x356   :  { %2289 = vmatpush.bf16.msrb.mxu1 %v4433_v41  ;;  %v4052_v41 = vld [vmem:[%s5613_s3 + $0x118] sm:$0xff] }
 0x359   :  { %2227 = vmatpush.bf16.msra.mxu2 %v4049_v12 }
 0x35a   :  { %2290 = vmatpush.bf16.msrb.mxu1 %v4444_v50  ;;  %v4054_v50 = vld [vmem:[%s5613_s3 + $0x108] sm:$0xff] }
 0x35c   :  { %2180 = vmatmul.bf16.gmra.mxu3 %v4968_v21 }
 0x35d   :  { %2228 = vmatpush.bf16.msra.mxu2 %v4050_v32 }
 0x35e   :  { %2291 = vmatpush.bf16.msrb.mxu1 %v4452_v55  ;;  %v4055_v55 = vld [vmem:[%s5613_s3 + $0x100] sm:$0xff] }
 0x361   :  { %2229 = vmatpush.bf16.msra.mxu2 %v4051_v6 }
 0x362   :  { %2292 = vmatpush.bf16.msrb.mxu1 %v4461_v59  ;;  %v4056_v59 = vld [vmem:[%s5613_s3 + $0x1f8] sm:$0xff] }
 0x364   :  { %2161 = vmatmul.bf16.gmra.mxu2 %v4963_v17 }
 0x365   :  { %2230 = vmatpush.bf16.msra.mxu2 %v4052_v41  ;;  %3784 = vmatmul.msk.bf16.gmra.mxu1 %vm395_vm0, %v4474_v63  ;;  %v4058_v63 = vld [vmem:[%s5613_s3 + $0x1e8] sm:$0xff] }
 0x366   :  { %2293 = vmatpush.bf16.msrb.mxu1 %v4469_v60  ;;  %v4057_v60 = vld [vmem:[%s5613_s3 + $0x1f0] sm:$0xff] }
 0x369   :  { %2231 = vmatpush.bf16.msra.mxu2 %v4053_v47 }
 0x36a   :  { %2294 = vmatpush.bf16.msrb.mxu1 %v4480_v2  ;;  %v4059_v2 = vld [vmem:[%s5613_s3 + $0x1e0] sm:$0xff] }
 0x36c   :  { %2253 = vmatmul.bf16.vlgmr.msra.gmra.mxu3 %v4950_v9 }
 0x36d   :  { %2232 = vmatpush.bf16.msra.mxu2 %v4054_v50 }
 0x36e   :  { %2295 = vmatpush.bf16.msrb.mxu1 %v4488_v3  ;;  %v4060_v3 = vld [vmem:[%s5613_s3 + $0x1d8] sm:$0xff] }
 0x371   :  { %2233 = vmatpush.bf16.msra.mxu2 %v4055_v55 }
 0x372   :  { %2296 = vmatpush.bf16.msrb.mxu1 %v4497_v11  ;;  %v4061_v11 = vld [vmem:[%s5613_s3 + $0x1d0] sm:$0xff] }
 0x374   :  { %2234 = vmatmul.bf16.vlgmr.msra.gmra.mxu2 %v4945_v5 }
 0x375   :  { %2308 = vmatpush.bf16.msrb.mxu2 %v4056_v59  ;;  %2297 = vmatmul.bf16.vlgmr.msrb.gmra.mxu1 %v4945_v5 }
 0x376   :  { %2371 = vmatpush.bf16.msra.mxu1 %v4503_v14  ;;  %v4062_v14 = vld [vmem:[%s5613_s3 + $0x1c8] sm:$0xff] }
 0x377   :  { %v5206_v25 = vpop.permute.xlu0 %1953 }
 0x379   :  { %2309 = vmatpush.bf16.msrb.mxu2 %v4057_v60 }
 0x37a   :  { %2372 = vmatpush.bf16.msra.mxu1 %v4510_v19  ;;  %v4063_v19 = vld [vmem:[%s5613_s3 + $0x1c0] sm:$0xff] }
 0x37c   :  { %2258 = vmatmul.bf16.gmra.mxu3 %v4968_v21 }
 0x37d   :  { %2310 = vmatpush.bf16.msrb.mxu2 %v4058_v63 }
 0x37e   :  { %2373 = vmatpush.bf16.msra.mxu1 %v4516_v30 }
 0x381   :  { %2311 = vmatpush.bf16.msrb.mxu2 %v4059_v2 }
 0x382   :  { %2374 = vmatpush.bf16.msra.mxu1 %v4529_v35 }
 0x384   :  { %2239 = vmatmul.bf16.gmra.mxu2 %v4963_v17 }
 0x385   :  { %2312 = vmatpush.bf16.msrb.mxu2 %v4060_v3  ;;  %2302 = vmatmul.bf16.gmra.mxu1 %v4963_v17 }
 0x386   :  { %2375 = vmatpush.bf16.msra.mxu1 %v4539_v37 }
 0x389   :  { %2313 = vmatpush.bf16.msrb.mxu2 %v4061_v11 }
 0x38a   :  { %2376 = vmatpush.bf16.msra.mxu1 %v4548_v42 }
 0x38c   :  { %v5215_v29 = vpop.permute.xlu1 %1963 }
 0x38d   :  { %2314 = vmatpush.bf16.msrb.mxu2 %v4062_v14 }
 0x38e   :  { %2377 = vmatpush.bf16.msra.mxu1 %v4557_v44 }
 0x38f   :  { %v1720_v30 = vpop.f32.mrf.mxu3 }
 0x390   :  { %v1730_v35 = vadd.f32 %v1720_v30, %v4978_v26 }
 0x391   :  { %2315 = vmatpush.bf16.msrb.mxu2 %v4063_v19 }
 0x392   :  { %2378 = vmatpush.bf16.msra.mxu1 %v4570_v48 }
 0x394   :  { %2316 = vmatmul.bf16.vlgmr.msrb.gmra.mxu2 %v4950_v9 }
 0x395   :  { %2379 = vmatmul.bf16.vlgmr.msra.gmra.mxu1 %v4950_v9 }
 0x397   :  { %v5198_v37 = vpop.f32.mrf.mxu3 }
 0x39f   :  { %v1725_v42 = vpop.f32.mrf.mxu3 }
 0x3a0   :  { %v1732_v45 = vadd.f32 %v1725_v42, %v4982_v54 }
 0x3a4   :  { %2321 = vmatmul.bf16.gmra.mxu2 %v4968_v21 }
 0x3a5   :  { %2384 = vmatmul.bf16.gmra.mxu1 %v4968_v21 }
 0x3a7   :  { %v5203_v7 = vpop.f32.mrf.mxu3 }
 0x3af   :  { %v2073_v44 = vpop.f32.mrf.mxu3 }
 0x3b7   :  { %v1933_v48 = vpop.f32.mrf.mxu2  ;;  %v5208_v38 = vpop.f32.mrf.mxu3 }
 0x3b8   :  { %v1943_v26 = vadd.f32 %v1933_v48, %v1730_v35 }
 0x3ba   :  { %v1971_v53 = vadd.f32 %v5206_v25, %v1943_v26 }
 0x3bc   :  { %v1979_v58 = vand.u32 2147483647, %v1971_v53  ;;  %v1975_v14 = vmax.f32 %v1971_v53, 0.0 }
 0x3be   :  { %v1983_v0 = vsub.f32 0.0, %v1979_v58 }
 0x3bf   :  { %v5211_v27 = vpop.f32.mrf.mxu2  ;;  %v5213_v43 = vpop.f32.mrf.mxu3 }
 0x3c0   :  { %v1987_v54 = vmul.f32 1.442695, %v1983_v0  ;;  %v2083_v0 = vld [vmem:[%s5619_s1] sm:$0xff] }
 0x3c2   :  { %3976 = vpow2.f32 %v1987_v54 }
 0x3c7   :  { %v1938_v24 = vpop.f32.mrf.mxu2  ;;  %v5217_v8 = vpop.f32.mrf.mxu3 }
 0x3c8   :  { %v3977_v1 = vpop.eup %3976  ;;  %v1945_v4 = vadd.f32 %v1938_v24, %v1732_v45 }
 0x3c9   :  { %v1995_v12 = vadd.f32 1.0, %v3977_v1  ;;  %v1998_v32 = vmul.f32 -0.5, %v3977_v1  ;;  %v2001_v55 = vand.u32 2147483647, %v3977_v1 }
 0x3ca   :  { %v1973_v6 = vadd.f32 %v5215_v29, %v1945_v4 }
 0x3cb   :  { %3978 = vlog2.f32 %v1995_v12  ;;  %v1999_v47 = vadd.f32 1.0, %v1998_v32  ;;  %vm2002_vm2 = vcmp.lt.f32.partialorder %v2001_v55, 0.0004427343 }
 0x3cc   :  { %v1981_v41 = vand.u32 2147483647, %v1973_v6 }
 0x3cd   :  { %v2000_v11 = vmul.f32 %v3977_v1, %v1999_v47 }
 0x3ce   :  { %v1985_v50 = vsub.f32 0.0, %v1981_v41 }
 0x3cf   :  { %v5220_v59 = vpop.f32.mrf.mxu2  ;;  %v2176_v63 = vpop.f32.mrf.mxu3 }
 0x3d0   :  { %v1991_v60 = vmul.f32 1.442695, %v1985_v50 }
 0x3d1   :  { %v3979_v2 = vpop.eup %3978 }
 0x3d2   :  { %v1997_v3 = vmul.f32 0.6931472, %v3979_v2  ;;  %3980 = vpow2.f32 %v1991_v60  ;;  %v1977_v60 = vmax.f32 %v1973_v6, 0.0 }
 0x3d4   :  { %v2003_v19 = vsel %vm2002_vm2, %v2000_v11, %v1997_v3  ;;  %v5227_v11 = vpop.f32.mrf.mxu1 }
 0x3d5   :  { %v2031_v30 = vadd.f32 %v2003_v19, %v1975_v14 }
 0x3d7   :  { %3982 = vtanh.f32 %v2031_v30  ;;  %v2157_v35 = vpop.f32.mrf.mxu2  ;;  %v2178_v45 = vpop.f32.mrf.mxu3  ;;  %v2085_v30 = vld [vmem:[%s5619_s1 + $0x10] sm:$0xff] }
 0x3d8   :  { %v3981_v42 = vpop.eup %3980 }
 0x3d9   :  { %v2013_v48 = vadd.f32 1.0, %v3981_v42  ;;  %v2016_v26 = vmul.f32 -0.5, %v3981_v42  ;;  %v2019_v1 = vand.u32 2147483647, %v3981_v42 }
 0x3db   :  { %3984 = vlog2.f32 %v2013_v48  ;;  %v2017_v24 = vadd.f32 1.0, %v2016_v26  ;;  %vm2020_vm3 = vcmp.lt.f32.partialorder %v2019_v1, 0.0004427343 }
 0x3dd   :  { %v3983_v58 = vpop.eup %3982  ;;  %v2018_v50 = vmul.f32 %v3981_v42, %v2017_v24 }
 0x3de   :  { %v2039_v54 = vmul.f32 %v3983_v58, %v1971_v53 }
 0x3df   :  { %v2159_v4 = vpop.f32.mrf.mxu2  ;;  %v2181_v12 = vpop.f32.mrf.mxu3 }
 0x3e0   :  { %v2087_v32 = vadd.f32 %v2083_v0, %v2039_v54  ;;  %v2179_v24 = vadd.f32 %v2178_v45, %v2159_v4 }
 0x3e1   :  { %v3985_v41 = vpop.eup %3984 }
 0x3e2   :  { %v2015_v47 = vmul.f32 0.6931472, %v3985_v41  ;;  %v5225_v55 = vadd.f32 %v2087_v32, %v2073_v44  ;;  %v5232_v44 = vpop.f32.mrf.mxu1  ;;  %v2177_v41 = vadd.f32 %v2176_v63, %v2157_v35  ;;  %v4065_v63 = vld [vmem:[%s5615_s4 + $0x18] sm:$0xff] }
 0x3e4   :  { %v2021_v2 = vsel %vm2020_vm3, %v2018_v50, %v2015_v47  ;;  %v2186_v47 = vpack.c.bf16 %v2179_v24, %v2177_v41 }
 0x3e5   :  { %v2033_v3 = vadd.f32 %v2021_v2, %v1977_v60 }
 0x3e7   :  { %3986 = vtanh.f32 %v2033_v3  ;;  %v2162_v14 = vpop.f32.mrf.mxu2  ;;  %v2183_v19 = vpop.f32.mrf.mxu3 }
 0x3e8   :  { %v2182_v58 = vadd.f32 %v2181_v12, %v2162_v14  ;;  %v4064_v12 = vld [vmem:[%s5615_s4 + $0x10] sm:$0xff] }
 0x3ea   :  { %v5237_v60 = vpop.f32.mrf.mxu1 }
 0x3ed   :  { %v3987_v53 = vpop.eup %3986 }
 0x3ee   :  { %v2041_v48 = vmul.f32 %v3987_v53, %v1973_v6 }
 0x3ef   :  { %v2164_v26 = vpop.f32.mrf.mxu2  ;;  %v2254_v54 = vpop.f32.mrf.mxu3 }
 0x3f0   :  { %v2184_v42 = vadd.f32 %v2183_v19, %v2164_v26  ;;  %v2089_v0 = vadd.f32 %v2085_v30, %v2041_v48 }
 0x3f2   :  { %v2187_v1 = vpack.c.bf16 %v2184_v42, %v2182_v58  ;;  %v5235_v32 = vadd.f32 %v2089_v0, %v5213_v43  ;;  %v5243_v45 = vpop.f32.mrf.mxu1  ;;  %v4066_v0 = vld [vmem:[%s5613_s3 + $0x238] sm:$0xff] }
 0x3f4   :  { %2194 = vmatpush.bf16.msra.mxu0 %v2187_v1  ;;  %v4067_v1 = vld [vmem:[%s5615_s4 + $0x20] sm:$0xff] }
 0x3f7   :  { %v2235_v50 = vpop.f32.mrf.mxu2  ;;  %v2256_v6 = vpop.f32.mrf.mxu3 }
 0x3f8   :  { %2195 = vmatpush.bf16.msra.mxu0 %v2186_v47  ;;  %v2255_v26 = vadd.f32 %v2254_v54, %v2235_v50  ;;  %v4068_v54 = vld [vmem:[%s5613_s3 + $0x230] sm:$0xff]  ;;  %v4069_v47 = vld [vmem:[%s5613_s3 + $0x228] sm:$0xff] }
 0x3fa   :  { %v2298_v35 = vpop.f32.mrf.mxu1 }
 0x3fb   :  { %3781 = vmatmul.msk.bf16.vlgmr.msra.gmra.mxu0 %vm395_vm0, %v4064_v12 }
 0x3ff   :  { %v2237_v2 = vpop.f32.mrf.mxu2  ;;  %v2259_v4 = vpop.f32.mrf.mxu3 }
 0x400   :  { %v2257_v30 = vadd.f32 %v2256_v6, %v2237_v2  ;;  %v4070_v6 = vld [vmem:[%s5613_s3 + $0x220] sm:$0xff]  ;;  %v4071_v2 = vld [vmem:[%s5613_s3 + $0x218] sm:$0xff] }
 0x402   :  { %v2264_v58 = vpack.c.bf16 %v2257_v30, %v2255_v26  ;;  %v2300_v24 = vpop.f32.mrf.mxu1 }
 0x407   :  { %v2240_v43 = vpop.f32.mrf.mxu2  ;;  %v2261_v3 = vpop.f32.mrf.mxu3 }
 0x408   :  { %v2260_v19 = vadd.f32 %v2259_v4, %v2240_v43  ;;  %v4072_v4 = vld [vmem:[%s5615_s4 + $0x28] sm:$0xff] }
 0x40a   :  { %v2303_v50 = vpop.f32.mrf.mxu1 }
 0x40b   :  { %3782 = vmatmul.msk.bf16.gmra.mxu0 %vm395_vm0, %v4065_v63  ;;  %v4073_v63 = vld [vmem:[%s5613_s3 + $0x210] sm:$0xff] }
 0x40f   :  { %v2242_v14 = vpop.f32.mrf.mxu2 }
 0x410   :  { %v2262_v53 = vadd.f32 %v2261_v3, %v2242_v14 }
 0x412   :  { %v2265_v48 = vpack.c.bf16 %v2262_v53, %v2260_v19  ;;  %v2305_v43 = vpop.f32.mrf.mxu1 }
 0x414   :  { %2272 = vmatpush.bf16.msrb.mxu0 %v2265_v48  ;;  %v4074_v48 = vld [vmem:[%s5613_s3 + $0x208] sm:$0xff] }
 0x417   :  { %v2317_v42 = vpop.f32.mrf.mxu2 }
 0x418   :  { %2273 = vmatpush.bf16.msrb.mxu0 %v2264_v58  ;;  %v2318_v19 = vadd.f32 %v2317_v42, %v2298_v35  ;;  %v4077_v35 = vld [vmem:[%s5613_s3 + $0x2b8] sm:$0xff]  ;;  %v4078_v42 = vld [vmem:[%s5613_s3 + $0x2f0] sm:$0xff] }
 0x41b   :  { %3785 = vmatmul.msk.bf16.vlgmr.msrb.gmra.mxu0 %vm395_vm0, %v4067_v1  ;;  %v4076_v1 = vld [vmem:[%s5613_s3 + $0x2f8] sm:$0xff] }
 0x41c   :  { %2352 = vmatpush.bf16.msra.mxu0 %v4066_v0  ;;  %v4075_v0 = vld [vmem:[%s5613_s3 + $0x200] sm:$0xff] }
 0x41f   :  { %v2319_v41 = vpop.f32.mrf.mxu2 }
 0x420   :  { %2353 = vmatpush.bf16.msra.mxu0 %v4068_v54  ;;  %v2320_v53 = vadd.f32 %v2319_v41, %v2300_v24  ;;  %v4079_v24 = vld [vmem:[%s5615_s4 + $0x30] sm:$0xff]  ;;  %v4081_v41 = vld [vmem:[%s5613_s3 + $0x2e8] sm:$0xff] }
 0x421   :  { %v4080_v54 = vld [vmem:[%s5613_s3 + $0x2b0] sm:$0xff] }
 0x422   :  { %v2327_v58 = vpack.c.bf16 %v2320_v53, %v2318_v19  ;;  %v4092_v19 = vld [vmem:[%s5613_s3 + $0x2c0] sm:$0xff] }
 0x423   :  { %v4093_v53 = vld [vmem:[%s5613_s3 + $0x280] sm:$0xff] }
 0x424   :  { %2354 = vmatpush.bf16.msra.mxu0 %v4069_v47  ;;  %v4082_v47 = vld [vmem:[%s5613_s3 + $0x2a8] sm:$0xff] }
 0x427   :  { %v2322_v12 = vpop.f32.mrf.mxu2 }
 0x428   :  { %2355 = vmatpush.bf16.msra.mxu0 %v4070_v6  ;;  %v2323_v3 = vadd.f32 %v2322_v12, %v2303_v50  ;;  %v4083_v50 = vld [vmem:[%s5613_s3 + $0x2e0] sm:$0xff]  ;;  %v4085_v12 = vld [vmem:[%s5613_s3 + $0x2d8] sm:$0xff] }
 0x429   :  { %v4084_v6 = vld [vmem:[%s5613_s3 + $0x2a0] sm:$0xff] }
 0x42b   :  { %3786 = vmatmul.msk.bf16.gmra.mxu0 %vm395_vm0, %v4072_v4  ;;  %v4087_v4 = vld [vmem:[%s5613_s3 + $0x2d0] sm:$0xff] }
 0x42c   :  { %2356 = vmatpush.bf16.msra.mxu0 %v4071_v2  ;;  %v4086_v2 = vld [vmem:[%s5613_s3 + $0x298] sm:$0xff] }
 0x42f   :  { %v2324_v14 = vpop.f32.mrf.mxu2 }
 0x430   :  { %2357 = vmatpush.bf16.msra.mxu0 %v4073_v63  ;;  %v2325_v30 = vadd.f32 %v2324_v14, %v2305_v43  ;;  %v4088_v43 = vld [vmem:[%s5615_s4 + $0x38] sm:$0xff]  ;;  %v4089_v63 = vld [vmem:[%s5613_s3 + $0x290] sm:$0xff]  ;;  %v4091_v14 = vld [vmem:[%s5613_s3 + $0x288] sm:$0xff] }
 0x432   :  { %v2328_v26 = vpack.c.bf16 %v2325_v30, %v2323_v3  ;;  %v4090_v3 = vld [vmem:[%s5613_s3 + $0x2c8] sm:$0xff]  ;;  %v4094_v30 = vld [vmem:[%s5613_s3 + $0x378] sm:$0xff] }
 0x434   :  { %2358 = vmatpush.bf16.msra.mxu0 %v4074_v48  ;;  %2335 = vmatpush.bf16.msrb.mxu3 %v2328_v26  ;;  %v4095_v48 = vld [vmem:[%s5613_s3 + $0x370] sm:$0xff]  ;;  %v4096_v26 = vld [vmem:[%s5613_s3 + $0x368] sm:$0xff] }
 0x438   :  { %2359 = vmatpush.bf16.msra.mxu0 %v4075_v0  ;;  %2336 = vmatpush.bf16.msrb.mxu3 %v2327_v58 }
 0x43b   :  { %3787 = vmatmul.msk.bf16.vlgmr.msrb.gmra.mxu3 %vm395_vm0, %v4079_v24  ;;  %2360 = vmatmul.bf16.vlgmr.msra.gmra.mxu0 %v4945_v5 }
 0x43c   :  { %2434 = vmatpush.bf16.msrb.mxu0 %v4076_v1  ;;  %2415 = vmatpush.bf16.msra.mxu3 %v4077_v35 }
 0x440   :  { %2435 = vmatpush.bf16.msrb.mxu0 %v4078_v42  ;;  %2416 = vmatpush.bf16.msra.mxu3 %v4080_v54 }
 0x444   :  { %2436 = vmatpush.bf16.msrb.mxu0 %v4081_v41  ;;  %2417 = vmatpush.bf16.msra.mxu3 %v4082_v47 }
 0x448   :  { %2437 = vmatpush.bf16.msrb.mxu0 %v4083_v50  ;;  %2418 = vmatpush.bf16.msra.mxu3 %v4084_v6 }
 0x44b   :  { %3788 = vmatmul.msk.bf16.gmra.mxu3 %vm395_vm0, %v4088_v43  ;;  %2365 = vmatmul.bf16.gmra.mxu0 %v4963_v17 }
 0x44c   :  { %2438 = vmatpush.bf16.msrb.mxu0 %v4085_v12  ;;  %2419 = vmatpush.bf16.msra.mxu3 %v4086_v2  ;;  %v2380_v12 = vpop.f32.mrf.mxu1 }
 0x450   :  { %2439 = vmatpush.bf16.msrb.mxu0 %v4087_v4  ;;  %2420 = vmatpush.bf16.msra.mxu3 %v4089_v63 }
 0x454   :  { %2440 = vmatpush.bf16.msrb.mxu0 %v4090_v3  ;;  %2421 = vmatpush.bf16.msra.mxu3 %v4091_v14  ;;  %v2382_v4 = vpop.f32.mrf.mxu1 }
 0x458   :  { %2441 = vmatpush.bf16.msrb.mxu0 %v4092_v19  ;;  %2422 = vmatpush.bf16.msra.mxu3 %v4093_v53 }
 0x45b   :  { %2423 = vmatmul.bf16.vlgmr.msra.gmra.mxu3 %v4945_v5  ;;  %2442 = vmatmul.bf16.vlgmr.msrb.gmra.mxu0 %v4950_v9 }
 0x45c   :  { %2497 = vmatpush.bf16.msrb.mxu3 %v4094_v30  ;;  %v2385_v3 = vpop.f32.mrf.mxu1 }
 0x460   :  { %2498 = vmatpush.bf16.msrb.mxu3 %v4095_v48 }
 0x464   :  { %2499 = vmatpush.bf16.msrb.mxu3 %v4096_v26  ;;  %v2387_v30 = vpop.f32.mrf.mxu1 }
 0x468   :  { %2500 = vmatpush.bf16.msrb.mxu3 %v4680_v56 }
 0x46b   :  { %2428 = vmatmul.bf16.gmra.mxu3 %v4963_v17  ;;  %2447 = vmatmul.bf16.gmra.mxu0 %v4968_v21 }
 0x46c   :  { %2501 = vmatpush.bf16.msrb.mxu3 %v4690_v49 }
 0x470   :  { %2502 = vmatpush.bf16.msrb.mxu3 %v4699_v34 }
 0x474   :  { %2503 = vmatpush.bf16.msrb.mxu3 %v4708_v36 }
 0x478   :  { %2504 = vmatpush.bf16.msrb.mxu3 %v4721_v23  ;;  %v2197_v58 = vpop.f32.mrf.mxu0 }
 0x479   :  { %v2217_v49 = vadd.f32 %v5227_v11, %v2197_v58 }
 0x47b   :  { %2505 = vmatmul.bf16.vlgmr.msrb.gmra.mxu3 %v4950_v9 }
 0x480   :  { %v2199_v0 = vpop.f32.mrf.mxu0 }
 0x481   :  { %v2219_v42 = vadd.f32 %v5232_v44, %v2199_v0 }
 0x488   :  { %v2202_v1 = vpop.f32.mrf.mxu0 }
 0x489   :  { %v2222_v36 = vadd.f32 %v5237_v60, %v2202_v1 }
 0x48b   :  { %2510 = vmatmul.bf16.gmra.mxu3 %v4968_v21 }
 0x490   :  { %v2204_v56 = vpop.f32.mrf.mxu0 }
 0x491   :  { %v2224_v47 = vadd.f32 %v5243_v45, %v2204_v56 }
 0x498   :  { %v2275_v35 = vpop.f32.mrf.mxu0 }
 0x499   :  { %v2285_v34 = vadd.f32 %v2275_v35, %v2217_v49 }
 0x4a0   :  { %v2277_v24 = vpop.f32.mrf.mxu0 }
 0x4a1   :  { %v2286_v54 = vadd.f32 %v2277_v24, %v2219_v42  ;;  %v4097_v42 = vld [vmem:[%s5613_s3 + $0x338] sm:$0xff]  ;;  %v4098_v24 = vld [vmem:[%s5615_s4 + $0x40] sm:$0xff] }
 0x4a8   :  { %v2280_v41 = vpop.f32.mrf.mxu0 }
 0x4a9   :  { %v2287_v23 = vadd.f32 %v2280_v41, %v2222_v36  ;;  %v4099_v36 = vld [vmem:[%s5613_s3 + $0x330] sm:$0xff] }
 0x4b0   :  { %v2282_v50 = vpop.f32.mrf.mxu0 }
 0x4b1   :  { %v2288_v6 = vadd.f32 %v2282_v50, %v2224_v47  ;;  %v4101_v50 = vld [vmem:[%s5613_s3 + $0x320] sm:$0xff] }
 0x4b8   :  { %v2361_v2 = vpop.f32.mrf.mxu0 }
 0x4b9   :  { %v2381_v1 = vadd.f32 %v2380_v12, %v2361_v2  ;;  %v4103_v2 = vld [vmem:[%s5615_s4 + $0x48] sm:$0xff] }
 0x4be   :  { %v2338_v43 = vpop.f32.mrf.mxu3 }
 0x4bf   :  { %v5363_v63 = vadd.f32 %v2338_v43, %v2285_v34  ;;  %v4104_v43 = vld [vmem:[%s5613_s3 + $0x310] sm:$0xff] }
 0x4c0   :  { %v2363_v11 = vpop.f32.mrf.mxu0 }
 0x4c1   :  { %v2383_v58 = vadd.f32 %v2382_v4, %v2363_v11  ;;  %v4105_v11 = vld [vmem:[%s5613_s3 + $0x308] sm:$0xff] }
 0x4c3   :  { %v2390_v49 = vpack.c.bf16 %v2383_v58, %v2381_v1  ;;  %v4108_v1 = vld [vmem:[%s5613_s3 + $0x3f0] sm:$0xff] }
 0x4c6   :  { %v2340_v14 = vpop.f32.mrf.mxu3 }
 0x4c7   :  { %v5365_v44 = vadd.f32 %v2340_v14, %v2286_v54 }
 0x4c8   :  { %v2366_v19 = vpop.f32.mrf.mxu0 }
 0x4c9   :  { %v2386_v45 = vadd.f32 %v2385_v3, %v2366_v19 }
 0x4ce   :  { %v2343_v53 = vpop.f32.mrf.mxu3 }
 0x4cf   :  { %v5367_v60 = vadd.f32 %v2343_v53, %v2287_v23  ;;  %v4100_v23 = vld [vmem:[%s5613_s3 + $0x328] sm:$0xff]  ;;  %v4106_v53 = vld [vmem:[%s5613_s3 + $0x300] sm:$0xff] }
 0x4d0   :  { %v2368_v48 = vpop.f32.mrf.mxu0 }
 0x4d1   :  { %v2388_v26 = vadd.f32 %v2387_v30, %v2368_v48 }
 0x4d3   :  { %v2391_v0 = vpack.c.bf16 %v2388_v26, %v2386_v45  ;;  %v4107_v26 = vld [vmem:[%s5613_s3 + $0x3f8] sm:$0xff] }
 0x4d5   :  { %2398 = vmatpush.bf16.msra.mxu2 %v2391_v0 }
 0x4d6   :  { %v2345_v56 = vpop.f32.mrf.mxu3 }
 0x4d7   :  { %v5369_v35 = vadd.f32 %v2345_v56, %v2288_v6  ;;  %v4102_v6 = vld [vmem:[%s5613_s3 + $0x318] sm:$0xff]  ;;  %v4109_v56 = vld [vmem:[%s5613_s3 + $0x3e8] sm:$0xff] }
 0x4d8   :  { %v2443_v34 = vpop.f32.mrf.mxu0 }
 0x4d9   :  { %2399 = vmatpush.bf16.msra.mxu2 %v2390_v49  ;;  %v4110_v49 = vld [vmem:[%s5613_s3 + $0x3b8] sm:$0xff] }
 0x4dc   :  { %3789 = vmatmul.msk.bf16.vlgmr.msra.gmra.mxu2 %vm395_vm0, %v4098_v24  ;;  %v4113_v24 = vld [vmem:[%s5613_s3 + $0x3d8] sm:$0xff] }
 0x4dd   :  { %2478 = vmatpush.bf16.msrb.mxu2 %v4097_v42  ;;  %v4112_v42 = vld [vmem:[%s5613_s3 + $0x3e0] sm:$0xff] }
 0x4de   :  { %v2424_v54 = vpop.f32.mrf.mxu3 }
 0x4df   :  { %v2444_v30 = vadd.f32 %v2443_v34, %v2424_v54  ;;  %v4111_v34 = vld [vmem:[%s5615_s4 + $0x50] sm:$0xff] }
 0x4e0   :  { %v2445_v41 = vpop.f32.mrf.mxu0  ;;  %v4114_v54 = vld [vmem:[%s5613_s3 + $0x3d0] sm:$0xff] }
 0x4e1   :  { %2479 = vmatpush.bf16.msrb.mxu2 %v4099_v36  ;;  %v5645_v36 = vld [vmem:[#allocation12_spill] sm:$0xff] }
 0x4e5   :  { %2480 = vmatpush.bf16.msrb.mxu2 %v4100_v23  ;;  %v5647_v23 = vld [vmem:[#allocation14_spill] sm:$0xff] }
 0x4e6   :  { %v2426_v47 = vpop.f32.mrf.mxu3 }
 0x4e7   :  { %v2446_v48 = vadd.f32 %v2445_v41, %v2426_v47  ;;  %v5646_v41 = vld [vmem:[#allocation13_spill] sm:$0xff]  ;;  %v5648_v47 = vld [vmem:[#allocation15_spill] sm:$0xff] }
 0x4e8   :  { %v2448_v12 = vpop.f32.mrf.mxu0 }
 0x4e9   :  { %2481 = vmatpush.bf16.msrb.mxu2 %v4101_v50  ;;  %v2453_v0 = vpack.c.bf16 %v2446_v48, %v2444_v30  ;;  %v5649_v50 = vld [vmem:[#allocation16_spill] sm:$0xff] }
 0x4ec   :  { %3790 = vmatmul.msk.bf16.gmra.mxu2 %vm395_vm0, %v4103_v2 }
 0x4ed   :  { %2482 = vmatpush.bf16.msrb.mxu2 %v4102_v6  ;;  %v5650_v6 = vld [vmem:[#allocation17_spill] sm:$0xff] }
 0x4ee   :  { %v2429_v4 = vpop.f32.mrf.mxu3 }
 0x4ef   :  { %v2449_v14 = vadd.f32 %v2448_v12, %v2429_v4  ;;  %v5651_v12 = vld [vmem:[#allocation18_spill] sm:$0xff] }
 0x4f0   :  { %v2450_v3 = vpop.f32.mrf.mxu0 }
 0x4f1   :  { %2483 = vmatpush.bf16.msrb.mxu2 %v4104_v43 }
 0x4f5   :  { %2484 = vmatpush.bf16.msrb.mxu2 %v4105_v11 }
 0x4f6   :  { %v2431_v19 = vpop.f32.mrf.mxu3 }
 0x4f7   :  { %v2451_v45 = vadd.f32 %v2450_v3, %v2431_v19 }
 0x4f9   :  { %2485 = vmatpush.bf16.msrb.mxu2 %v4106_v53  ;;  %v2454_v58 = vpack.c.bf16 %v2451_v45, %v2449_v14 }
 0x4fb   :  { %2461 = vmatpush.bf16.msrb.mxu1 %v2454_v58 }
 0x4fc   :  { %2486 = vmatmul.bf16.vlgmr.msrb.gmra.mxu2 %v4945_v5 }
 0x4fd   :  { %2560 = vmatpush.bf16.msra.mxu2 %v4107_v26 }
 0x4fe   :  { %v2506_v11 = vpop.f32.mrf.mxu3 }
 0x4ff   :  { %2462 = vmatpush.bf16.msrb.mxu1 %v2453_v0 }
 0x501   :  { %2561 = vmatpush.bf16.msra.mxu2 %v4108_v1 }
 0x502   :  { %3791 = vmatmul.msk.bf16.vlgmr.msrb.gmra.mxu1 %vm395_vm0, %v4111_v34 }
 0x503   :  { %2541 = vmatpush.bf16.msra.mxu1 %v4110_v49 }
 0x505   :  { %2562 = vmatpush.bf16.msra.mxu2 %v4109_v56 }
 0x507   :  { %2542 = vmatpush.bf16.msra.mxu1 %v4786_v15  ;;  %v4115_v15 = vld [vmem:[%s5613_s3 + $0x3c8] sm:$0xff] }
 0x509   :  { %2563 = vmatpush.bf16.msra.mxu2 %v4112_v42 }
 0x50b   :  { %2543 = vmatpush.bf16.msra.mxu1 %v4793_v22  ;;  %v4116_v22 = vld [vmem:[%s5613_s3 + $0x3c0] sm:$0xff] }
 0x50c   :  { %2491 = vmatmul.bf16.gmra.mxu2 %v4963_v17 }
 0x50d   :  { %2564 = vmatpush.bf16.msra.mxu2 %v4113_v24  ;;  %v4117_v24 = vld [vmem:[%s5613_s3 + $0x438] sm:$0xff] }
 0x50f   :  { %2544 = vmatpush.bf16.msra.mxu1 %v5645_v36  ;;  %v4119_v36 = vld [vmem:[%s5613_s3 + $0x430] sm:$0xff] }
 0x511   :  { %2565 = vmatpush.bf16.msra.mxu2 %v4114_v54  ;;  %v4118_v54 = vld [vmem:[%s5615_s4 + $0x60] sm:$0xff] }
 0x512   :  { %3792 = vmatmul.msk.bf16.gmra.mxu1 %vm395_vm0, %v5647_v23  ;;  %v4120_v23 = vld [vmem:[%s5613_s3 + $0x428] sm:$0xff] }
 0x513   :  { %2545 = vmatpush.bf16.msra.mxu1 %v5646_v41 }
 0x515   :  { %2566 = vmatpush.bf16.msra.mxu2 %v4115_v15 }
 0x517   :  { %2546 = vmatpush.bf16.msra.mxu1 %v5648_v47 }
 0x519   :  { %2567 = vmatpush.bf16.msra.mxu2 %v4116_v22  ;;  %v4121_v22 = vld [vmem:[%s5613_s3 + $0x420] sm:$0xff] }
 0x51b   :  { %2547 = vmatpush.bf16.msra.mxu1 %v5649_v50 }
 0x51c   :  { %2568 = vmatmul.bf16.vlgmr.msra.gmra.mxu2 %v4950_v9 }
 0x51f   :  { %2548 = vmatpush.bf16.msra.mxu1 %v5650_v6  ;;  %v4122_v6 = vld [vmem:[%s5613_s3 + $0x418] sm:$0xff] }
 0x522   :  { %2549 = vmatmul.bf16.vlgmr.msra.gmra.mxu1 %v4945_v5 }
 0x523   :  { %2623 = vmatpush.bf16.msrb.mxu1 %v5651_v12  ;;  %v4123_v12 = vld [vmem:[%s5615_s4 + $0x68] sm:$0xff] }
 0x527   :  { %2624 = vmatpush.bf16.msrb.mxu1 %v4843_v51 }
 0x52b   :  { %2625 = vmatpush.bf16.msrb.mxu1 %v4849_v61 }
 0x52c   :  { %2573 = vmatmul.bf16.gmra.mxu2 %v4968_v21 }
 0x52f   :  { %2626 = vmatpush.bf16.msrb.mxu1 %v4862_v33 }
 0x532   :  { %2554 = vmatmul.bf16.gmra.mxu1 %v4963_v17 }
 0x533   :  { %2627 = vmatpush.bf16.msrb.mxu1 %v4872_v40 }
 0x537   :  { %2628 = vmatpush.bf16.msrb.mxu1 %v4881_v46 }
 0x53b   :  { %2629 = vmatpush.bf16.msrb.mxu1 %v4890_v31 }
 0x53f   :  { %2630 = vmatpush.bf16.msrb.mxu1 %v4903_v18 }
 0x542   :  { %2631 = vmatmul.bf16.vlgmr.msrb.gmra.mxu1 %v4950_v9  ;;  %v2508_v9 = vpop.f32.mrf.mxu3 }
 0x54a   :  { %v2511_v53 = vpop.f32.mrf.mxu3 }
 0x552   :  { %2636 = vmatmul.bf16.gmra.mxu1 %v4968_v21 }
 0x55f   :  { %v2401_v51 = vpop.f32.mrf.mxu2 }
 0x560   :  { %v2411_v61 = vadd.f32 %v2401_v51, %v5363_v63  ;;  %v4124_v51 = vld [vmem:[%s5613_s3 + $0x410] sm:$0xff] }
 0x567   :  { %v2403_v33 = vpop.f32.mrf.mxu2 }
 0x568   :  { %v2412_v2 = vadd.f32 %v2403_v33, %v5365_v44  ;;  %v2513_v44 = vpop.f32.mrf.mxu3 }
 0x56f   :  { %v2406_v4 = vpop.f32.mrf.mxu2 }
 0x570   :  { %v2413_v40 = vadd.f32 %v2406_v4, %v5367_v60 }
 0x577   :  { %v2408_v46 = vpop.f32.mrf.mxu2 }
 0x578   :  { %v2414_v43 = vadd.f32 %v2408_v46, %v5369_v35 }
 0x57f   :  { %v2464_v31 = vpop.f32.mrf.mxu1  ;;  %v2487_v3 = vpop.f32.mrf.mxu2 }
 0x580   :  { %v5463_v18 = vadd.f32 %v2464_v31, %v2411_v61  ;;  %v2507_v56 = vadd.f32 %v2506_v11, %v2487_v3  ;;  %v4126_v3 = vld [vmem:[%s5613_s3 + $0x400] sm:$0xff] }
 0x587   :  { %v2466_v14 = vpop.f32.mrf.mxu1  ;;  %v2489_v21 = vpop.f32.mrf.mxu2 }
 0x588   :  { %v2475_v19 = vadd.f32 %v2466_v14, %v2412_v2  ;;  %v2509_v35 = vadd.f32 %v2508_v9, %v2489_v21 }
 0x58a   :  { %v2516_v49 = vpack.c.bf16 %v2509_v35, %v2507_v56 }
 0x58f   :  { %v2469_v63 = vpop.f32.mrf.mxu1  ;;  %v2492_v30 = vpop.f32.mrf.mxu2 }
 0x590   :  { %v2476_v48 = vadd.f32 %v2469_v63, %v2413_v40  ;;  %v2512_v60 = vadd.f32 %v2511_v53, %v2492_v30 }
 0x597   :  { %v2471_v45 = vpop.f32.mrf.mxu1  ;;  %v2494_v26 = vpop.f32.mrf.mxu2 }
 0x598   :  { %v2477_v58 = vadd.f32 %v2471_v45, %v2414_v43  ;;  %v2514_v0 = vadd.f32 %v2513_v44, %v2494_v26  ;;  %v4125_v43 = vld [vmem:[%s5613_s3 + $0x408] sm:$0xff] }
 0x59a   :  { %v2517_v1 = vpack.c.bf16 %v2514_v0, %v2512_v60 }
 0x59c   :  { %2524 = vmatpush.bf16.msra.mxu0 %v2517_v1 }
 0x59f   :  { %v2550_v34 = vpop.f32.mrf.mxu1  ;;  %v2569_v42 = vpop.f32.mrf.mxu2 }
 0x5a0   :  { %2525 = vmatpush.bf16.msra.mxu0 %v2516_v49  ;;  %v2570_v4 = vadd.f32 %v2569_v42, %v2550_v34  ;;  %v3801_v42 = vld [vmem:[%s5618_s2 + $0x30] sm:$0xff] }
 0x5a3   :  { %3793 = vmatmul.msk.bf16.vlgmr.msra.gmra.mxu0 %vm395_vm0, %v4118_v54 }
 0x5a4   :  { %2604 = vmatpush.bf16.msrb.mxu0 %v4117_v24  ;;  %v3802_v24 = vld [vmem:[%s5618_s2 + $0x38] sm:$0xff] }
 0x5a5   :  { %v2745_v54 = vpack.c.bf16 %v3802_v24, %v3801_v42 }
 0x5a7   :  { %v2552_v15 = vpop.f32.mrf.mxu1  ;;  %v2571_v41 = vpop.f32.mrf.mxu2 }
 0x5a8   :  { %2605 = vmatpush.bf16.msrb.mxu0 %v4119_v36  ;;  %v2572_v40 = vadd.f32 %v2571_v41, %v2552_v15 }
 0x5aa   :  { %v2579_v31 = vpack.c.bf16 %v2572_v40, %v2570_v4 }
 0x5ac   :  { %2606 = vmatpush.bf16.msrb.mxu0 %v4120_v23 }
 0x5af   :  { %v2555_v47 = vpop.f32.mrf.mxu1  ;;  %v2574_v50 = vpop.f32.mrf.mxu2 }
 0x5b0   :  { %2607 = vmatpush.bf16.msrb.mxu0 %v4121_v22  ;;  %v2575_v61 = vadd.f32 %v2574_v50, %v2555_v47 }
 0x5b3   :  { %3794 = vmatmul.msk.bf16.gmra.mxu0 %vm395_vm0, %v4123_v12 }
 0x5b4   :  { %2608 = vmatpush.bf16.msrb.mxu0 %v4122_v6 }
 0x5b7   :  { %v2557_v33 = vpop.f32.mrf.mxu1  ;;  %v2576_v2 = vpop.f32.mrf.mxu2 }
 0x5b8   :  { %2609 = vmatpush.bf16.msrb.mxu0 %v4124_v51  ;;  %v2577_v46 = vadd.f32 %v2576_v2, %v2557_v33  ;;  %v5527_v33 = vpop.permute.xlu0 %1958 }
 0x5ba   :  { %v2580_v11 = vpack.c.bf16 %v2577_v46, %v2575_v61 }
 0x5bc   :  { %2610 = vmatpush.bf16.msrb.mxu0 %v4125_v43  ;;  %2587 = vmatpush.bf16.msra.mxu3 %v2580_v11 }
 0x5c0   :  { %2611 = vmatpush.bf16.msrb.mxu0 %v4126_v3  ;;  %2588 = vmatpush.bf16.msra.mxu3 %v2579_v31 }
 0x5c3   :  { %3795 = vmatmul.msk.bf16.vlgmr.msra.gmra.mxu3 %vm395_vm0, %v4989_v16  ;;  %2612 = vmatmul.bf16.vlgmr.msrb.gmra.mxu0 %v4945_v5 }
 0x5c4   :  { %2759 = vmatpush.bf16.msrb.mxu3 %v4994_v20  ;;  %v2632_v20 = vpop.f32.mrf.mxu1 }
 0x5cc   :  { %v2634_v60 = vpop.f32.mrf.mxu1 }
 0x5d3   :  { %3796 = vmatmul.msk.bf16.gmra.mxu3 %vm395_vm0, %v5011_v62  ;;  %2617 = vmatmul.bf16.gmra.mxu0 %v4963_v17  ;;  %v3799_v62 = vld [vmem:[%s5618_s2 + $0x20] sm:$0xff]  ;;  %v3800_v17 = vld [vmem:[%s5618_s2 + $0x28] sm:$0xff] }
 0x5d4   :  { %v2637_v0 = vpop.f32.mrf.mxu1 }
 0x620   :  { %v2527_v9 = vpop.f32.mrf.mxu0 }
 0x621   :  { %v2537_v14 = vadd.f32 %v2527_v9, %v5463_v18  ;;  %v2744_v18 = vpack.c.bf16 %v3800_v17, %v3799_v62  ;;  %v5537_v62 = vpop.permute.xlu1 %1968 }
 0x623   :  { %3803 = vmatmul.msk.bf16.vlgmr.msrb.gmra.mxu3 %vm2057_vm1, %v2744_v18 }
 0x628   :  { %v2529_v21 = vpop.f32.mrf.mxu0 }
 0x629   :  { %v2538_v53 = vadd.f32 %v2529_v21, %v2475_v19  ;;  %v2639_v19 = vpop.f32.mrf.mxu1 }
 0x630   :  { %v2532_v63 = vpop.f32.mrf.mxu0 }
 0x631   :  { %v2539_v30 = vadd.f32 %v2532_v63, %v2476_v48 }
 0x633   :  { %3804 = vmatmul.msk.bf16.gmra.mxu3 %vm2057_vm1, %v2745_v54 }
 0x638   :  { %v2534_v44 = vpop.f32.mrf.mxu0 }
 0x639   :  { %v2540_v45 = vadd.f32 %v2534_v44, %v2477_v58 }
 0x640   :  { %v2613_v26 = vpop.f32.mrf.mxu0 }
 0x641   :  { %v2633_v49 = vadd.f32 %v2632_v20, %v2613_v26 }
 0x646   :  { %v2590_v36 = vpop.f32.mrf.mxu3 }
 0x647   :  { %v2600_v15 = vadd.f32 %v2590_v36, %v2537_v14 }
 0x648   :  { %v2615_v16 = vpop.f32.mrf.mxu0 }
 0x649   :  { %v2635_v1 = vadd.f32 %v2634_v60, %v2615_v16 }
 0x64b   :  { %v2642_v34 = vpack.c.bf16 %v2635_v1, %v2633_v49 }
 0x64e   :  { %v2592_v41 = vpop.f32.mrf.mxu3 }
 0x64f   :  { %v2601_v6 = vadd.f32 %v2592_v41, %v2538_v53 }
 0x650   :  { %v2618_v5 = vpop.f32.mrf.mxu0 }
 0x651   :  { %v2638_v58 = vadd.f32 %v2637_v0, %v2618_v5 }
 0x656   :  { %v2595_v2 = vpop.f32.mrf.mxu3 }
 0x657   :  { %v2602_v40 = vadd.f32 %v2595_v2, %v2539_v30 }
 0x658   :  { %v2620_v48 = vpop.f32.mrf.mxu0 }
 0x659   :  { %v2640_v35 = vadd.f32 %v2639_v19, %v2620_v48 }
 0x65b   :  { %v2643_v56 = vpack.c.bf16 %v2640_v35, %v2638_v58 }
 0x65d   :  { %2650 = vmatpush.bf16.msrb.mxu2 %v2643_v56 }
 0x65e   :  { %v2597_v21 = vpop.f32.mrf.mxu3 }
 0x65f   :  { %v2603_v44 = vadd.f32 %v2597_v21, %v2540_v45 }
 0x661   :  { %2651 = vmatpush.bf16.msrb.mxu2 %v2642_v34 }
 0x664   :  { %3797 = vmatmul.msk.bf16.vlgmr.msrb.gmra.mxu2 %vm395_vm0, %v5049_v52 }
 0x674   :  { %3798 = vmatmul.msk.bf16.gmra.mxu2 %vm395_vm0, %v5093_v10 }
 0x6e7   :  { %v2653_v23 = vpop.f32.mrf.mxu2 }
 0x6e8   :  { %v2663_v22 = vadd.f32 %v2653_v23, %v2600_v15 }
 0x6ea   :  { %v5524_v47 = vadd.f32 %v2663_v22, %v5206_v25 }
 0x6ec   :  { %v2675_v50 = vand.u32 2147483647, %v5524_v47  ;;  %v2671_v58 = vmax.f32 %v5524_v47, 0.0 }
 0x6ee   :  { %v2679_v12 = vsub.f32 0.0, %v2675_v50  ;;  %v2761_v50 = vpop.f32.mrf.mxu3 }
 0x6ef   :  { %v2655_v51 = vpop.f32.mrf.mxu2 }
 0x6f0   :  { %v2683_v61 = vmul.f32 1.442695, %v2679_v12  ;;  %v2664_v52 = vadd.f32 %v2655_v51, %v2601_v6 }
 0x6f2   :  { %3988 = vpow2.f32 %v2683_v61  ;;  %v5530_v10 = vadd.f32 %v2664_v52, %v5527_v33  ;;  %v3805_v61 = vld [vmem:[%s5619_s1 + $0x20] sm:$0xff] }
 0x6f4   :  { %v2676_v4 = vand.u32 2147483647, %v5530_v10  ;;  %v2672_v22 = vmax.f32 %v5530_v10, 0.0 }
 0x6f6   :  { %v2680_v46 = vsub.f32 0.0, %v2676_v4 }
 0x6f7   :  { %v2658_v25 = vpop.f32.mrf.mxu2 }
 0x6f8   :  { %v3989_v43 = vpop.eup %3988  ;;  %v2685_v11 = vmul.f32 1.442695, %v2680_v46  ;;  %v2665_v31 = vadd.f32 %v2658_v25, %v2602_v40 }
 0x6f9   :  { %v2691_v3 = vadd.f32 1.0, %v3989_v43  ;;  %v2694_v9 = vmul.f32 -0.5, %v3989_v43  ;;  %v2697_v26 = vand.u32 2147483647, %v3989_v43 }
 0x6fa   :  { %3990 = vpow2.f32 %v2685_v11  ;;  %v5534_v14 = vadd.f32 %v2665_v31, %v5215_v29 }
 0x6fb   :  { %3992 = vlog2.f32 %v2691_v3  ;;  %v2695_v63 = vadd.f32 1.0, %v2694_v9  ;;  %vm2698_vm4 = vcmp.lt.f32.partialorder %v2697_v26, 0.0004427343 }
 0x6fc   :  { %v2677_v53 = vand.u32 2147483647, %v5534_v14  ;;  %v2673_v21 = vmax.f32 %v5534_v14, 0.0 }
 0x6fd   :  { %v2696_v17 = vmul.f32 %v3989_v43, %v2695_v63 }
 0x6fe   :  { %v2681_v20 = vsub.f32 0.0, %v2677_v53 }
 0x6ff   :  { %v2660_v30 = vpop.f32.mrf.mxu2 }
 0x700   :  { %v3991_v60 = vpop.eup %3990  ;;  %v2687_v16 = vmul.f32 1.442695, %v2681_v20  ;;  %v2666_v0 = vadd.f32 %v2660_v30, %v2603_v44  ;;  %v2763_v44 = vpop.f32.mrf.mxu3  ;;  %v3806_v20 = vld [vmem:[%s5619_s1 + $0x28] sm:$0xff] }
 0x701   :  { %v3993_v5 = vpop.eup %3992  ;;  %v2700_v18 = vadd.f32 1.0, %v3991_v60  ;;  %v2703_v29 = vmul.f32 -0.5, %v3991_v60  ;;  %v2706_v34 = vand.u32 2147483647, %v3991_v60 }
 0x702   :  { %v2693_v19 = vmul.f32 0.6931472, %v3993_v5  ;;  %3994 = vpow2.f32 %v2687_v16  ;;  %v5540_v48 = vadd.f32 %v2666_v0, %v5537_v62 }
 0x703   :  { %3996 = vlog2.f32 %v2700_v18  ;;  %v2704_v56 = vadd.f32 1.0, %v2703_v29  ;;  %vm2707_vm5 = vcmp.lt.f32.partialorder %v2706_v34, 0.0004427343  ;;  %v5653_v34 = vld [vmem:[#allocation2_spill] sm:$0xff] }
 0x704   :  { %v2699_v45 = vsel %vm2698_vm4, %v2696_v17, %v2693_v19  ;;  %v2678_v35 = vand.u32 2147483647, %v5540_v48  ;;  %v2674_v19 = vmax.f32 %v5540_v48, 0.0 }
 0x705   :  { %v2727_v1 = vadd.f32 %v2699_v45, %v2671_v58  ;;  %v2705_v41 = vmul.f32 %v3991_v60, %v2704_v56 }
 0x706   :  { %v2682_v49 = vsub.f32 0.0, %v2678_v35  ;;  %v3807_v35 = vld [vmem:[%s5619_s1 + $0x30] sm:$0xff] }
 0x707   :  { %3998 = vtanh.f32 %v2727_v1 }
 0x708   :  { %v3995_v42 = vpop.eup %3994  ;;  %v2689_v24 = vmul.f32 1.442695, %v2682_v49  ;;  %v2766_v1 = vpop.f32.mrf.mxu3  ;;  %v5652_v49 = vld [vmem:[#allocation3_spill] sm:$0xff] }
 0x709   :  { %v3997_v54 = vpop.eup %3996  ;;  %v2709_v36 = vadd.f32 1.0, %v3995_v42  ;;  %v2712_v23 = vmul.f32 -0.5, %v3995_v42  ;;  %v2715_v4 = vand.u32 2147483647, %v3995_v42 }
 0x70a   :  { %v2702_v15 = vmul.f32 0.6931472, %v3997_v54  ;;  %4000 = vpow2.f32 %v2689_v24  ;;  %v5654_v54 = vld [vmem:[#allocation6_spill] sm:$0xff] }
 0x70b   :  { %4002 = vlog2.f32 %v2709_v36  ;;  %v2713_v52 = vadd.f32 1.0, %v2712_v23  ;;  %vm2716_vm6 = vcmp.lt.f32.partialorder %v2715_v4, 0.0004427343 }
 0x70c   :  { %v2708_v6 = vsel %vm2707_vm5, %v2705_v41, %v2702_v15  ;;  %v5655_v41 = vld [vmem:[#allocation8_spill] sm:$0xff] }
 0x70d   :  { %v3999_v12 = vpop.eup %3998  ;;  %v2728_v51 = vadd.f32 %v2708_v6, %v2672_v22  ;;  %v2714_v31 = vmul.f32 %v3995_v42, %v2713_v52  ;;  %v449_v42 = vadd.f32 %v5653_v34, %v5652_v49  ;;  %v3808_v22 = vld [vmem:[%s5619_s1 + $0x38] sm:$0xff] }
 0x70e   :  { %v2735_v2 = vmul.f32 %v3999_v12, %v5524_v47 }
 0x70f   :  { %4004 = vtanh.f32 %v2728_v51  ;;  %v666_v36 = vadd.f32 %v5654_v54, %v449_v42 }
 0x710   :  { %v4001_v40 = vpop.eup %4000  ;;  %v2776_v46 = vadd.f32 %v3805_v61, %v2735_v2  ;;  %v2768_v61 = vpop.f32.mrf.mxu3 }
 0x711   :  { %v4003_v25 = vpop.eup %4002  ;;  %v2718_v43 = vadd.f32 1.0, %v4001_v40  ;;  %v2721_v3 = vmul.f32 -0.5, %v4001_v40  ;;  %v2724_v60 = vand.u32 2147483647, %v4001_v40  ;;  %v879_v23 = vadd.f32 %v5655_v41, %v666_v36 }
 0x712   :  { %v2711_v11 = vmul.f32 0.6931472, %v4003_v25  ;;  %v2780_v9 = vadd.f32 %v2776_v46, %v2761_v50  ;;  %v5656_v50 = vld [vmem:[#allocation10_spill] sm:$0xff] }
 0x713   :  { %4006 = vlog2.f32 %v2718_v43  ;;  %v2722_v26 = vadd.f32 1.0, %v2721_v3  ;;  %vm2725_vm7 = vcmp.lt.f32.partialorder %v2724_v60, 0.0004427343  ;;  %v1092_v6 = vadd.f32 %v5656_v50, %v879_v23  ;;  %v5658_v3 = vld [vmem:[#allocation4_spill] sm:$0xff] }
 0x714   :  { %v2717_v53 = vsel %vm2716_vm6, %v2714_v31, %v2711_v11  ;;  %2788 = vrot.lane.b32.xlu2 %v2780_v9, %s4128_s13  ;;  %v5657_v31 = vld [vmem:[#allocation5_spill] sm:$0xff]  ;;  %v5659_v9 = vld [vmem:[#allocation7_spill] sm:$0xff] }
 0x715   :  { %v4005_v63 = vpop.eup %4004  ;;  %v2729_v47 = vadd.f32 %v2717_v53, %v2673_v21  ;;  %v2723_v17 = vmul.f32 %v4001_v40, %v2722_v26  ;;  %v1305_v51 = vadd.f32 %v4973_v28, %v1092_v6  ;;  %v454_v28 = vadd.f32 %v5658_v3, %v5657_v31 }
 0x716   :  { %v2736_v30 = vmul.f32 %v4005_v63, %v5530_v10 }
 0x717   :  { %4008 = vtanh.f32 %v2729_v47  ;;  %v1518_v2 = vadd.f32 %v4980_v57, %v1305_v51  ;;  %v668_v21 = vadd.f32 %v5659_v9, %v454_v28  ;;  %v5660_v57 = vld [vmem:[#allocation9_spill] sm:$0xff]  ;;  %v5661_v47 = vld [vmem:[#allocation11_spill] sm:$0xff] }
 0x718   :  { %v2777_v16 = vadd.f32 %v3806_v20, %v2736_v30 }
 0x719   :  { %v4007_v0 = vpop.eup %4006  ;;  %v1731_v4 = vadd.f32 %v5198_v37, %v1518_v2  ;;  %v881_v63 = vadd.f32 %v5660_v57, %v668_v21 }
 0x71a   :  { %v2720_v5 = vmul.f32 0.6931472, %v4007_v0  ;;  %v2781_v18 = vadd.f32 %v2777_v16, %v2763_v44 }
 0x71b   :  { %v1944_v40 = vadd.f32 %v5211_v27, %v1731_v4  ;;  %v1094_v44 = vadd.f32 %v5661_v47, %v881_v63 }
 0x71c   :  { %v2726_v29 = vsel %vm2725_vm7, %v2723_v17, %v2720_v5  ;;  %2790 = vrot.lane.b32.xlu2 %v2781_v18, %s4128_s13 }
 0x71d   :  { %v4009_v58 = vpop.eup %4008  ;;  %v2730_v45 = vadd.f32 %v2726_v29, %v2674_v19  ;;  %v1972_v46 = vadd.f32 %v5527_v33, %v1944_v40  ;;  %v1307_v37 = vadd.f32 %v4976_v39, %v1094_v44 }
 0x71e   :  { %v2737_v10 = vmul.f32 %v4009_v58, %v5534_v14 }
 0x71f   :  { %4010 = vtanh.f32 %v2730_v45  ;;  %v1980_v25 = vand.u32 2147483647, %v1972_v46  ;;  %v1520_v27 = vadd.f32 %v4984_v13, %v1307_v37  ;;  %v1976_v19 = vmax.f32 %v1972_v46, 0.0 }
 0x720   :  { %v2778_v56 = vadd.f32 %v3807_v35, %v2737_v10 }
 0x721   :  { %v1984_v43 = vsub.f32 0.0, %v1980_v25  ;;  %v1733_v20 = vadd.f32 %v5203_v7, %v1520_v27 }
 0x722   :  { %v2782_v24 = vadd.f32 %v2778_v56, %v2766_v1 }
 0x723   :  { %v1946_v60 = vadd.f32 %v5220_v59, %v1733_v20  ;;  %v2084_v59 = vld [vmem:[%s5619_s1 + $0x8] sm:$0xff] }
 0x724   :  { %2792 = vrot.lane.b32.xlu0 %v2782_v24, %s4128_s13 }
 0x725   :  { %v4011_v15 = vpop.eup %4010  ;;  %v1974_v17 = vadd.f32 %v5537_v62, %v1946_v60 }
 0x726   :  { %v2738_v14 = vmul.f32 %v4011_v15, %v5540_v48  ;;  %v1989_v48 = vmul.f32 1.442695, %v1984_v43 }
 0x727   :  { %v1982_v29 = vand.u32 2147483647, %v1974_v17 }
 0x728   :  { %v2779_v12 = vadd.f32 %v3808_v22, %v2738_v14  ;;  %4012 = vpow2.f32 %v1989_v48  ;;  %v1978_v22 = vmax.f32 %v1974_v17, 0.0 }
 0x729   :  { %v1986_v39 = vsub.f32 0.0, %v1982_v29 }
 0x72a   :  { %v2783_v52 = vadd.f32 %v2779_v12, %v2768_v61  ;;  %v2086_v12 = vld [vmem:[%s5619_s1 + $0x18] sm:$0xff] }
 0x72b   :  { %v1993_v13 = vmul.f32 1.442695, %v1986_v39 }
 0x72c   :  { %2794 = vrot.lane.b32.xlu1 %v2783_v52, %s4128_s13 }
 0x72e   :  { %v4013_v11 = vpop.eup %4012 }
 0x72f   :  { %v2004_v53 = vadd.f32 1.0, %v4013_v11  ;;  %v2007_v33 = vmul.f32 -0.5, %v4013_v11  ;;  %v2010_v16 = vand.u32 2147483647, %v4013_v11 }
 0x731   :  { %4014 = vlog2.f32 %v2004_v53  ;;  %v2008_v30 = vadd.f32 1.0, %v2007_v33  ;;  %vm2011_vm8 = vcmp.lt.f32.partialorder %v2010_v16, 0.0004427343 }
 0x733   :  { %v2009_v5 = vmul.f32 %v4013_v11, %v2008_v30 }
 0x737   :  { %v4015_v26 = vpop.eup %4014 }
 0x738   :  { %v2006_v0 = vmul.f32 0.6931472, %v4015_v26 }
 0x73a   :  { %v2012_v18 = vsel %vm2011_vm8, %v2009_v5, %v2006_v0 }
 0x73b   :  { %v2032_v58 = vadd.f32 %v2012_v18, %v1976_v19 }
 0x73d   :  { %4016 = vtanh.f32 %v2032_v58 }
 0x73e   :  { %4018 = vpow2.f32 %v1993_v13 }
 0x743   :  { %v4017_v45 = vpop.eup %4016 }
 0x744   :  { %v2040_v7 = vmul.f32 %v4017_v45, %v1972_v46  ;;  %v4019_v10 = vpop.eup %4018 }
 0x745   :  { %v2022_v56 = vadd.f32 1.0, %v4019_v10  ;;  %v2025_v24 = vmul.f32 -0.5, %v4019_v10  ;;  %v2028_v36 = vand.u32 2147483647, %v4019_v10 }
 0x746   :  { %v2088_v1 = vadd.f32 %v2084_v59, %v2040_v7 }
 0x747   :  { %4020 = vlog2.f32 %v2022_v56  ;;  %vm2029_vm10 = vcmp.lt.f32.partialorder %v2028_v36, 0.0004427343 }
 0x748   :  { %v2092_v49 = vadd.f32 %v2088_v1, %v5208_v38 }
 0x74d   :  { %v4021_v54 = vpop.eup %4020 }
 0x74e   :  { %v2024_v15 = vmul.f32 0.6931472, %v4021_v54 }
 0x76e   :  { %v2789_v35 = vpop.permute.xlu2 %2788 }
 0x76f   :  { %v2801_v62 = vsel %vm2800_vm9, %v5225_v55, %v2789_v35  ;;  %v2026_v55 = vadd.f32 1.0, %v2025_v24 }
 0x770   :  { %2805 = vst [vmem:[%s5620_s7] sm:$0xff] %v2801_v62 }
 0x771   :  { %v2027_v41 = vmul.f32 %v4019_v10, %v2026_v55 }
 0x773   :  { %v2030_v23 = vsel %vm2029_vm10, %v2027_v41, %v2024_v15 }
 0x774   :  { %v2034_v14 = vadd.f32 %v2030_v23, %v1978_v22 }
 0x776   :  { %v2791_v34 = vpop.permute.xlu2 %2790  ;;  %4022 = vtanh.f32 %v2034_v14 }
 0x777   :  { %v2802_v42 = vsel %vm2800_vm9, %v2092_v49, %v2791_v34 }
 0x778   :  { %2806 = vst [vmem:[%s5620_s7 + $0x8] sm:$0xff] %v2802_v42 }
 0x77c   :  { %v4023_v38 = vpop.eup %4022 }
 0x77d   :  { %v2042_v50 = vmul.f32 %v4023_v38, %v1974_v17 }
 0x77f   :  { %v2090_v61 = vadd.f32 %v2086_v12, %v2042_v50 }
 0x781   :  { %v2094_v52 = vadd.f32 %v2090_v61, %v5217_v8 }
 0x796   :  { %v2793_v6 = vpop.permute.xlu0 %2792 }
 0x797   :  { %v2803_v51 = vsel %vm2800_vm9, %v5235_v32, %v2793_v6 }
 0x798   :  { %2807 = vst [vmem:[%s5620_s7 + $0x10] sm:$0xff] %v2803_v51 }
 0x79e   :  { %v2795_v2 = vpop.permute.xlu1 %2794 }
 0x79f   :  { %v2804_v4 = vsel %vm2800_vm9, %v2094_v52, %v2795_v2 }
 0x7a0   :  { %2808 = vst [vmem:[%s5620_s7 + $0x18] sm:$0xff] %v2804_v4 }

</bundles_post_ra>
